<compile_context>
chip_gen: v6e
topology: v6e:2x2x1
jax: 0.10.0
libtpu: 0.0.40
codegen_flags: <defaults>
</compile_context>

<pallas_src>
import jax
import jax.numpy as jnp
from jax.experimental import pallas as pl
from jax.experimental.pallas import tpu as pltpu


def _cdiv(a, b):
    return -(-a // b)


def _make_resblock_kernel(K, P, L_pad, L_real, Bt, same, use_taps, cast_parts):
    """Builds the kernel body.

    use_taps:   conv as K accumulated matmuls (Cin not a multiple of 8).
    cast_parts: cast taps to bf16 before the sublane concat (Cin % 16 == 0).
    """

    def kernel(x_ref, w1_ref, b1_ref, w2_ref, b2_ref, *rest):
        if same:
            (o_ref,) = rest
        else:
            wc_ref, bc_ref, o_ref = rest

        # ---- hoisted column masks (shared by both convs / all K taps) ----
        cols = jax.lax.broadcasted_iota(jnp.int32, (1, L_pad), 1)
        tap_valid = [None] * K
        for k in range(K):
            d = k - P
            if d != 0:
                tap_valid[k] = (cols >= -d) & (cols < L_pad - d)
        real_mask = (cols < L_real) if (L_pad != L_real) else None

        def taps_one(h):
            # h: (C, L_pad) f32 -> list of K shifted copies, tap k = h[:, l+k-P],
            # out-of-range columns zeroed.  Rolls on the XLU, masks on the VPU.
            out = []
            for k in range(K):
                d = k - P
                if d == 0:
                    out.append(h)
                else:
                    rolled = pltpu.roll(h, shift=(-d) % L_pad, axis=1)
                    out.append(jnp.where(tap_valid[k], rolled, 0.0))
            return out

        def conv(w_ref, b_col, elems):
            # elems: Bt activations (Csrc, L_pad) f32 -> (Cdst, Bt*L_pad) f32.
            taps = [taps_one(h) for h in elems]              # [Bt][K] (Csrc, L_pad)
            if use_taps:
                # K accumulated MXU matmuls; w_ref is (K, Cdst, Csrc).
                y = None
                for k in range(K):
                    part = jnp.concatenate(
                        [taps[b][k] for b in range(Bt)], axis=1).astype(jnp.bfloat16)
                    yk = jnp.dot(w_ref[k], part, preferred_element_type=jnp.float32)
                    y = yk if y is None else y + yk
            else:
                # Single im2col matmul; w_ref is (Cdst, K*Csrc).
                if cast_parts:
                    panels = [jnp.concatenate(
                        [t.astype(jnp.bfloat16) for t in taps[b]], axis=0)
                        for b in range(Bt)]
                else:
                    panels = [jnp.concatenate(taps[b], axis=0).astype(jnp.bfloat16)
                              for b in range(Bt)]
                a = jnp.concatenate(panels, axis=1)          # (K*Csrc, Bt*L_pad) bf16
                y = jnp.dot(w_ref[...], a, preferred_element_type=jnp.float32)
            return y + b_col

        xs = [x_ref[b] for b in range(Bt)]                   # Bt x (Cin, L_pad) f32
        hs = [jnp.maximum(x, 0.0) for x in xs]               # relu(x)

        # ---- conv1 (Cin -> Cin) + relu: one matmul over Bt*L_pad lanes ----
        y1 = jnp.maximum(conv(w1_ref, b1_ref[...], hs), 0.0)  # (Cin, Bt*L_pad)

        # Per-element views for conv2 (re-zero padded columns so the original
        # zero-padding semantics survive the L -> L_pad padding).
        y1s = []
        for b in range(Bt):
            y1_b = y1[:, b * L_pad:(b + 1) * L_pad]           # 128-aligned slice
            if real_mask is not None:
                y1_b = jnp.where(real_mask, y1_b, 0.0)
            y1s.append(y1_b)

        # ---- conv2 (Cin -> Cout) ----
        y2 = conv(w2_ref, b2_ref[...], y1s)                   # (Cout, Bt*L_pad)

        # ---- residual path ----
        if same:
            skip = jnp.concatenate(xs, axis=1)
        else:
            x_cat = jnp.concatenate([x.astype(jnp.bfloat16) for x in xs], axis=1)
            skip = jnp.dot(wc_ref[...], x_cat,
                           preferred_element_type=jnp.float32) + bc_ref[...]

        out = (y2 + skip).astype(o_ref.dtype)
        for b in range(Bt):                                   # lane-dense stores
            o_ref[b] = out[:, b * L_pad:(b + 1) * L_pad]

    return kernel


def _vmem_limit_and_batch_tile(B, Cin, Cout, K, L_pad):
    """Generation-aware scoped-VMEM request and batch tile Bt."""
    try:
        cap = int(pltpu.get_tpu_info().vmem_capacity_bytes)
    except Exception:
        cap = 64 * 1024 * 1024                 # conservative default (v7x per-core)
    # ~60% of physical, capped at 100 MiB (v7x -> ~38 MiB, v5e/v6e -> ~76 MiB).
    vmem_limit = int(min(0.6 * cap, 100 * 1024 * 1024))

    # Rough per-element footprint: double-buffered x/out blocks, shifted-tap
    # panels (f32 + bf16 transients), f32 conv outputs; 1.5x safety factor.
    per_elem = L_pad * (8 * Cin + 8 * Cout + 6 * K * Cin + 4 * (Cin + 2 * Cout))
    per_elem = int(per_elem * 1.5) + 1
    weight_bytes = 4 * K * Cin * (Cin + Cout) + 4 * Cin * Cout + 8 * (Cin + 2 * Cout)
    budget = max(vmem_limit - weight_bytes, per_elem)

    bt = max(1, min(B, budget // per_elem))
    if B >= 2:
        bt = min(bt, _cdiv(B, 2))   # keep >= 2 parallel grid steps (v7x has 2 TCs)
    return vmem_limit, int(min(bt, 64))


def resblock1d_forward(x_ncl, params, *, kernel_size, padding, batch_tile=None):
    """x_ncl: (B, Cin, L) float32, PyTorch NCL layout. Returns (B, Cout, L) f32."""
    B, Cin, L = x_ncl.shape
    w1, b1, w2, b2, wc, bc = params
    Cout = w2.shape[0]
    K, P = kernel_size, padding
    # Residual add requires conv output length == input length.
    assert 2 * P == K - 1, "ResBlock1d residual add needs 'same' length convs"
    same = (Cin == Cout)

    use_taps = (Cin % 8 != 0)                    # sublane-misaligned concat -> K dots
    cast_parts = (not use_taps) and (Cin % 16 == 0)

    # Lane-dense L: pad to a multiple of 128 (stores stay unmasked vst).
    L_pad = max(128, _cdiv(L, 128) * 128)

    vmem_limit, bt_auto = _vmem_limit_and_batch_tile(B, Cin, Cout, K, L_pad)
    Bt = int(batch_tile) if batch_tile is not None else bt_auto
    Bt = max(1, min(Bt, B))
    steps = _cdiv(B, Bt)
    B_pad = steps * Bt

    x_in = x_ncl.astype(jnp.float32)
    if B_pad != B or L_pad != L:
        x_in = jnp.pad(x_in, ((0, B_pad - B), (0, 0), (0, L_pad - L)))

    # ---- weight prep (bf16 MXU operands) ----
    if use_taps:
        # per-tap layout: (K, Cdst, Cin)
        w1_m = jnp.transpose(w1, (2, 0, 1)).astype(jnp.bfloat16)
        w2_m = jnp.transpose(w2, (2, 0, 1)).astype(jnp.bfloat16)
        w1_shape, w2_shape = (K, Cin, Cin), (K, Cout, Cin)
    else:
        # im2col layout: W[co, k*Cin + ci] = w[co, ci, k]
        w1_m = jnp.transpose(w1, (0, 2, 1)).reshape(Cin, K * Cin).astype(jnp.bfloat16)
        w2_m = jnp.transpose(w2, (0, 2, 1)).reshape(Cout, K * Cin).astype(jnp.bfloat16)
        w1_shape, w2_shape = (Cin, K * Cin), (Cout, K * Cin)
    b1_c = b1.astype(jnp.float32)[:, None]                    # (Cin, 1)
    b2_c = b2.astype(jnp.float32)[:, None]                    # (Cout, 1)

    inputs = [x_in, w1_m, b1_c, w2_m, b2_c]
    resident_shapes = [w1_shape, (Cin, 1), w2_shape, (Cout, 1)]
    if not same:                                              # only DMA skip conv if used
        inputs += [wc[:, :, 0].astype(jnp.bfloat16),          # (Cout, Cin)
                   bc.astype(jnp.float32)[:, None]]           # (Cout, 1)
        resident_shapes += [(Cout, Cin), (Cout, 1)]

    kernel = _make_resblock_kernel(K, P, L_pad, L, Bt, same, use_taps, cast_parts)

    def _resident_spec(shape, buffered):
        zeros = (0,) * len(shape)
        idx = lambda i, _z=zeros: _z
        if buffered:
            # Constant-index blocks don't need double buffering.
            return pl.BlockSpec(shape, idx, pipeline_mode=pl.Buffered(1))
        return pl.BlockSpec(shape, idx)

    def _call(buffered):
        in_specs = [pl.BlockSpec((Bt, Cin, L_pad), lambda i: (i, 0, 0))]
        in_specs += [_resident_spec(s, buffered) for s in resident_shapes]
        return pl.pallas_call(
            kernel,
            out_shape=jax.ShapeDtypeStruct((B_pad, Cout, L_pad), jnp.float32),
            grid_spec=pltpu.PrefetchScalarGridSpec(
                num_scalar_prefetch=0,
                grid=(steps,),
                in_specs=in_specs,
                out_specs=pl.BlockSpec((Bt, Cout, L_pad), lambda i: (i, 0, 0)),
            ),
            compiler_params=pltpu.CompilerParams(
                dimension_semantics=("parallel",),
                vmem_limit_bytes=vmem_limit,
            ),
        )(*inputs)

    try:
        out = _call(True)
    except Exception:
        # pl.Buffered(1) on resident weights unsupported in this build: fall back.
        out = _call(False)

    return out[:B, :, :L]


# -------------------- reference (plain JAX, for verification) --------------------
def resblock1d_ref(x, params, *, kernel_size, padding, matmul_dtype=jnp.float32):
    """Reference. matmul_dtype=bfloat16 emulates the kernel's MXU operand
    rounding (accumulation stays f32) for a tight numerical check."""
    w1, b1, w2, b2, wc, bc = params
    cast = lambda a: a.astype(matmul_dtype).astype(jnp.float32)

    def conv(inp, w, b, pad):
        y = jax.lax.conv_general_dilated(
            cast(inp), cast(w), window_strides=(1,), padding=[(pad, pad)],
            dimension_numbers=("NCH", "OIH", "NCH"),
            precision=jax.lax.Precision.HIGHEST)
        return y + b[None, :, None]

    out = jax.nn.relu(x)
    out = conv(out, w1, b1, padding)
    out = jax.nn.relu(out)
    out = conv(out, w2, b2, padding)
    if w2.shape[0] != w1.shape[1]:      # out_features != in_features
        out = out + conv(x, wc, bc, 0)
    else:
        out = out + x
    return out


# -------------------- deterministic parameter init --------------------
def init_params(key, in_features, out_features, kernel_size):
    ks = jax.random.split(key, 6)

    def u(k, shape, fan_in):
        bound = 1.0 / jnp.sqrt(fan_in)
        return jax.random.uniform(k, shape, jnp.float32, -bound, bound)

    w1 = u(ks[0], (in_features, in_features, kernel_size), in_features * kernel_size)
    b1 = u(ks[1], (in_features,), in_features * kernel_size)
    w2 = u(ks[2], (out_features, in_features, kernel_size), in_features * kernel_size)
    b2 = u(ks[3], (out_features,), in_features * kernel_size)
    wc = u(ks[4], (out_features, in_features, 1), in_features)
    bc = u(ks[5], (out_features,), in_features)
    return (w1, b1, w2, b2, wc, bc)


if __name__ == "__main__":
    key = jax.random.PRNGKey(0)

    def run_case(case_key, B, Cin, Cout, L, K, P):
        kx, kp = jax.random.split(case_key)
        x = jax.random.normal(kx, (B, Cin, L), jnp.float32)
        params = init_params(kp, Cin, Cout, K)

        out = jax.block_until_ready(
            resblock1d_forward(x, params, kernel_size=K, padding=P))
        assert out.shape == (B, Cout, L)

        # Tight check vs reference with bf16-rounded matmul operands (what the
        # kernel feeds the MXU; accumulation is f32 in both).
        ref_bf16 = resblock1d_ref(x, params, kernel_size=K, padding=P,
                                  matmul_dtype=jnp.bfloat16)
        assert jnp.allclose(out, ref_bf16, atol=5e-3, rtol=5e-3), \
            "mismatch vs bf16-operand reference"

        # Loose check vs full-f32 reference (bounds the bf16 precision loss).
        ref_f32 = resblock1d_ref(x, params, kernel_size=K, padding=P)
        assert jnp.allclose(out, ref_f32, atol=1e-1, rtol=2e-2), \
            "mismatch vs f32 reference"

    k1, k2, k3 = jax.random.split(key, 3)
    # projection skip + multi-element batching (Bt=4 -> 2 parallel grid steps)
    run_case(k1, B=8, Cin=8, Cout=16, L=128, K=3, P=1)
    # identity skip (in_features == out_features), different kernel size
    run_case(k2, B=2, Cin=8, Cout=8, L=128, K=5, P=2)
    # sublane-misaligned Cin (K-accumulated-dot path) + L not multiple of 128
    # (wrapper pad + in-kernel re-mask) + batch padding (B=3 -> B_pad=4)
    run_case(k3, B=3, Cin=6, Cout=12, L=96, K=3, P=1)

    print("KERNEL_OK")
</pallas_src>

<mosaic_0001>
module attributes {stable_mosaic.version = 11 : i64} {
  func.func @kernel(%arg0: i32, %arg1: memref<4x8x128xf32, #tpu.memory_space<vmem>>, %arg2: memref<8x24xbf16, #tpu.memory_space<vmem>>, %arg3: memref<8x1xf32, #tpu.memory_space<vmem>>, %arg4: memref<16x24xbf16, #tpu.memory_space<vmem>>, %arg5: memref<16x1xf32, #tpu.memory_space<vmem>>, %arg6: memref<16x8xbf16, #tpu.memory_space<vmem>>, %arg7: memref<16x1xf32, #tpu.memory_space<vmem>>, %arg8: memref<4x16x128xf32, #tpu.memory_space<vmem>>) attributes {dimension_semantics = [#tpu.dimension_semantics<parallel>], iteration_bounds = array<i64: 2>, scalar_prefetch = 0 : i64, scratch_operands = 0 : i64, tpu.core_type = #tpu.core_type<tc>, window_params = [{transform_indices = @transform_0, window_bounds = array<i64: 4, 8, 128>}, {pipeline_mode = #tpu.pipeline_mode<synchronous>, transform_indices = @transform_1, window_bounds = array<i64: 8, 24>}, {pipeline_mode = #tpu.pipeline_mode<synchronous>, transform_indices = @transform_2, window_bounds = array<i64: 8, 1>}, {pipeline_mode = #tpu.pipeline_mode<synchronous>, transform_indices = @transform_3, window_bounds = array<i64: 16, 24>}, {pipeline_mode = #tpu.pipeline_mode<synchronous>, transform_indices = @transform_4, window_bounds = array<i64: 16, 1>}, {pipeline_mode = #tpu.pipeline_mode<synchronous>, transform_indices = @transform_5, window_bounds = array<i64: 16, 8>}, {pipeline_mode = #tpu.pipeline_mode<synchronous>, transform_indices = @transform_6, window_bounds = array<i64: 16, 1>}, {transform_indices = @transform_7, window_bounds = array<i64: 4, 16, 128>}]} {
    %0 = tpu.iota {dimensions = array<i32: 1>} : vector<1x128xi32>
    %c1_i32 = arith.constant 1 : i32
    %1 = vector.broadcast %c1_i32 : i32 to vector<1x128xi32>
    %2 = arith.cmpi sge, %0, %1 : vector<1x128xi32>
    %c129_i32 = arith.constant 129 : i32
    %3 = vector.broadcast %c129_i32 : i32 to vector<1x128xi32>
    %4 = arith.cmpi slt, %0, %3 : vector<1x128xi32>
    %5 = arith.andi %2, %4 : vector<1x128xi1>
    %c-1_i32 = arith.constant -1 : i32
    %6 = vector.broadcast %c-1_i32 : i32 to vector<1x128xi32>
    %7 = arith.cmpi sge, %0, %6 : vector<1x128xi32>
    %c127_i32 = arith.constant 127 : i32
    %8 = vector.broadcast %c127_i32 : i32 to vector<1x128xi32>
    %9 = arith.cmpi slt, %0, %8 : vector<1x128xi32>
    %10 = arith.andi %7, %9 : vector<1x128xi1>
    %c0 = arith.constant 0 : index
    %c0_0 = arith.constant 0 : index
    %c0_1 = arith.constant 0 : index
    %11 = vector.load %arg1[%c0, %c0_0, %c0_1] : memref<4x8x128xf32, #tpu.memory_space<vmem>>, vector<1x8x128xf32>
    %12 = vector.shape_cast %11 : vector<1x8x128xf32> to vector<8x128xf32>
    %c1 = arith.constant 1 : index
    %c0_2 = arith.constant 0 : index
    %c0_3 = arith.constant 0 : index
    %13 = vector.load %arg1[%c1, %c0_2, %c0_3] : memref<4x8x128xf32, #tpu.memory_space<vmem>>, vector<1x8x128xf32>
    %14 = vector.shape_cast %13 : vector<1x8x128xf32> to vector<8x128xf32>
    %c2 = arith.constant 2 : index
    %c0_4 = arith.constant 0 : index
    %c0_5 = arith.constant 0 : index
    %15 = vector.load %arg1[%c2, %c0_4, %c0_5] : memref<4x8x128xf32, #tpu.memory_space<vmem>>, vector<1x8x128xf32>
    %16 = vector.shape_cast %15 : vector<1x8x128xf32> to vector<8x128xf32>
    %c3 = arith.constant 3 : index
    %c0_6 = arith.constant 0 : index
    %c0_7 = arith.constant 0 : index
    %17 = vector.load %arg1[%c3, %c0_6, %c0_7] : memref<4x8x128xf32, #tpu.memory_space<vmem>>, vector<1x8x128xf32>
    %18 = vector.shape_cast %17 : vector<1x8x128xf32> to vector<8x128xf32>
    %cst = arith.constant 0.000000e+00 : f32
    %19 = vector.broadcast %cst : f32 to vector<8x128xf32>
    %20 = arith.maximumf %12, %19 : vector<8x128xf32>
    %cst_8 = arith.constant 0.000000e+00 : f32
    %21 = vector.broadcast %cst_8 : f32 to vector<8x128xf32>
    %22 = arith.maximumf %14, %21 : vector<8x128xf32>
    %cst_9 = arith.constant 0.000000e+00 : f32
    %23 = vector.broadcast %cst_9 : f32 to vector<8x128xf32>
    %24 = arith.maximumf %16, %23 : vector<8x128xf32>
    %cst_10 = arith.constant 0.000000e+00 : f32
    %25 = vector.broadcast %cst_10 : f32 to vector<8x128xf32>
    %26 = arith.maximumf %18, %25 : vector<8x128xf32>
    %c0_11 = arith.constant 0 : index
    %c0_12 = arith.constant 0 : index
    %27 = vector.load %arg3[%c0_11, %c0_12] : memref<8x1xf32, #tpu.memory_space<vmem>>, vector<8x1xf32>
    %c1_i32_13 = arith.constant 1 : i32
    %28 = tpu.dynamic_rotate %20 by %c1_i32_13 dim 1 : vector<8x128xf32>, i32 -> vector<8x128xf32>
    %cst_14 = arith.constant 0.000000e+00 : f32
    %29 = vector.shape_cast %5 : vector<1x128xi1> to vector<1x128xi1>
    %30 = vector.broadcast %29 : vector<1x128xi1> to vector<8x128xi1>
    %31 = vector.broadcast %cst_14 : f32 to vector<8x128xf32>
    %32 = arith.select %30, %28, %31 : vector<8x128xi1>, vector<8x128xf32>
    %c127_i32_15 = arith.constant 127 : i32
    %33 = tpu.dynamic_rotate %20 by %c127_i32_15 dim 1 : vector<8x128xf32>, i32 -> vector<8x128xf32>
    %cst_16 = arith.constant 0.000000e+00 : f32
    %34 = vector.shape_cast %10 : vector<1x128xi1> to vector<1x128xi1>
    %35 = vector.broadcast %34 : vector<1x128xi1> to vector<8x128xi1>
    %36 = vector.broadcast %cst_16 : f32 to vector<8x128xf32>
    %37 = arith.select %35, %33, %36 : vector<8x128xi1>, vector<8x128xf32>
    %c1_i32_17 = arith.constant 1 : i32
    %38 = tpu.dynamic_rotate %22 by %c1_i32_17 dim 1 : vector<8x128xf32>, i32 -> vector<8x128xf32>
    %cst_18 = arith.constant 0.000000e+00 : f32
    %39 = vector.shape_cast %5 : vector<1x128xi1> to vector<1x128xi1>
    %40 = vector.broadcast %39 : vector<1x128xi1> to vector<8x128xi1>
    %41 = vector.broadcast %cst_18 : f32 to vector<8x128xf32>
    %42 = arith.select %40, %38, %41 : vector<8x128xi1>, vector<8x128xf32>
    %c127_i32_19 = arith.constant 127 : i32
    %43 = tpu.dynamic_rotate %22 by %c127_i32_19 dim 1 : vector<8x128xf32>, i32 -> vector<8x128xf32>
    %cst_20 = arith.constant 0.000000e+00 : f32
    %44 = vector.shape_cast %10 : vector<1x128xi1> to vector<1x128xi1>
    %45 = vector.broadcast %44 : vector<1x128xi1> to vector<8x128xi1>
    %46 = vector.broadcast %cst_20 : f32 to vector<8x128xf32>
    %47 = arith.select %45, %43, %46 : vector<8x128xi1>, vector<8x128xf32>
    %c1_i32_21 = arith.constant 1 : i32
    %48 = tpu.dynamic_rotate %24 by %c1_i32_21 dim 1 : vector<8x128xf32>, i32 -> vector<8x128xf32>
    %cst_22 = arith.constant 0.000000e+00 : f32
    %49 = vector.shape_cast %5 : vector<1x128xi1> to vector<1x128xi1>
    %50 = vector.broadcast %49 : vector<1x128xi1> to vector<8x128xi1>
    %51 = vector.broadcast %cst_22 : f32 to vector<8x128xf32>
    %52 = arith.select %50, %48, %51 : vector<8x128xi1>, vector<8x128xf32>
    %c127_i32_23 = arith.constant 127 : i32
    %53 = tpu.dynamic_rotate %24 by %c127_i32_23 dim 1 : vector<8x128xf32>, i32 -> vector<8x128xf32>
    %cst_24 = arith.constant 0.000000e+00 : f32
    %54 = vector.shape_cast %10 : vector<1x128xi1> to vector<1x128xi1>
    %55 = vector.broadcast %54 : vector<1x128xi1> to vector<8x128xi1>
    %56 = vector.broadcast %cst_24 : f32 to vector<8x128xf32>
    %57 = arith.select %55, %53, %56 : vector<8x128xi1>, vector<8x128xf32>
    %c1_i32_25 = arith.constant 1 : i32
    %58 = tpu.dynamic_rotate %26 by %c1_i32_25 dim 1 : vector<8x128xf32>, i32 -> vector<8x128xf32>
    %cst_26 = arith.constant 0.000000e+00 : f32
    %59 = vector.shape_cast %5 : vector<1x128xi1> to vector<1x128xi1>
    %60 = vector.broadcast %59 : vector<1x128xi1> to vector<8x128xi1>
    %61 = vector.broadcast %cst_26 : f32 to vector<8x128xf32>
    %62 = arith.select %60, %58, %61 : vector<8x128xi1>, vector<8x128xf32>
    %c127_i32_27 = arith.constant 127 : i32
    %63 = tpu.dynamic_rotate %26 by %c127_i32_27 dim 1 : vector<8x128xf32>, i32 -> vector<8x128xf32>
    %cst_28 = arith.constant 0.000000e+00 : f32
    %64 = vector.shape_cast %10 : vector<1x128xi1> to vector<1x128xi1>
    %65 = vector.broadcast %64 : vector<1x128xi1> to vector<8x128xi1>
    %66 = vector.broadcast %cst_28 : f32 to vector<8x128xf32>
    %67 = arith.select %65, %63, %66 : vector<8x128xi1>, vector<8x128xf32>
    %68 = tpu.concatenate %32, %20, %37 in 0 : vector<8x128xf32>, vector<8x128xf32>, vector<8x128xf32> -> vector<24x128xf32>
    %69 = arith.truncf %68 : vector<24x128xf32> to vector<24x128xbf16>
    %70 = tpu.concatenate %42, %22, %47 in 0 : vector<8x128xf32>, vector<8x128xf32>, vector<8x128xf32> -> vector<24x128xf32>
    %71 = arith.truncf %70 : vector<24x128xf32> to vector<24x128xbf16>
    %72 = tpu.concatenate %52, %24, %57 in 0 : vector<8x128xf32>, vector<8x128xf32>, vector<8x128xf32> -> vector<24x128xf32>
    %73 = arith.truncf %72 : vector<24x128xf32> to vector<24x128xbf16>
    %74 = tpu.concatenate %62, %26, %67 in 0 : vector<8x128xf32>, vector<8x128xf32>, vector<8x128xf32> -> vector<24x128xf32>
    %75 = arith.truncf %74 : vector<24x128xf32> to vector<24x128xbf16>
    %76 = tpu.concatenate %69, %71, %73, %75 in 1 : vector<24x128xbf16>, vector<24x128xbf16>, vector<24x128xbf16>, vector<24x128xbf16> -> vector<24x512xbf16>
    %c0_29 = arith.constant 0 : index
    %c0_30 = arith.constant 0 : index
    %77 = vector.load %arg2[%c0_29, %c0_30] : memref<8x24xbf16, #tpu.memory_space<vmem>>, vector<8x24xbf16>
    %cst_31 = arith.constant dense<0.000000e+00> : vector<8x512xf32>
    %78 = tpu.matmul %77, %76, %cst_31 {dimension_numbers = #tpu.dot_dimension_numbers<[1], [0], [0], [1], [0, 0, 1, 1], [], []>} : vector<8x24xbf16>, vector<24x512xbf16>, vector<8x512xf32> -> vector<8x512xf32>
    %79 = vector.broadcast %27 : vector<8x1xf32> to vector<8x512xf32>
    %80 = arith.addf %78, %79 : vector<8x512xf32>
    %cst_32 = arith.constant 0.000000e+00 : f32
    %81 = vector.broadcast %cst_32 : f32 to vector<8x512xf32>
    %82 = arith.maximumf %80, %81 : vector<8x512xf32>
    %83 = vector.extract_strided_slice %82 {offsets = [0, 0], sizes = [8, 128], strides = [1, 1]} : vector<8x512xf32> to vector<8x128xf32>
    %84 = vector.extract_strided_slice %82 {offsets = [0, 128], sizes = [8, 128], strides = [1, 1]} : vector<8x512xf32> to vector<8x128xf32>
    %85 = vector.extract_strided_slice %82 {offsets = [0, 256], sizes = [8, 128], strides = [1, 1]} : vector<8x512xf32> to vector<8x128xf32>
    %86 = vector.extract_strided_slice %82 {offsets = [0, 384], sizes = [8, 128], strides = [1, 1]} : vector<8x512xf32> to vector<8x128xf32>
    %c0_33 = arith.constant 0 : index
    %c0_34 = arith.constant 0 : index
    %87 = vector.load %arg5[%c0_33, %c0_34] : memref<16x1xf32, #tpu.memory_space<vmem>>, vector<16x1xf32>
    %c1_i32_35 = arith.constant 1 : i32
    %88 = tpu.dynamic_rotate %83 by %c1_i32_35 dim 1 : vector<8x128xf32>, i32 -> vector<8x128xf32>
    %cst_36 = arith.constant 0.000000e+00 : f32
    %89 = vector.shape_cast %5 : vector<1x128xi1> to vector<1x128xi1>
    %90 = vector.broadcast %89 : vector<1x128xi1> to vector<8x128xi1>
    %91 = vector.broadcast %cst_36 : f32 to vector<8x128xf32>
    %92 = arith.select %90, %88, %91 : vector<8x128xi1>, vector<8x128xf32>
    %c127_i32_37 = arith.constant 127 : i32
    %93 = tpu.dynamic_rotate %83 by %c127_i32_37 dim 1 : vector<8x128xf32>, i32 -> vector<8x128xf32>
    %cst_38 = arith.constant 0.000000e+00 : f32
    %94 = vector.shape_cast %10 : vector<1x128xi1> to vector<1x128xi1>
    %95 = vector.broadcast %94 : vector<1x128xi1> to vector<8x128xi1>
    %96 = vector.broadcast %cst_38 : f32 to vector<8x128xf32>
    %97 = arith.select %95, %93, %96 : vector<8x128xi1>, vector<8x128xf32>
    %c1_i32_39 = arith.constant 1 : i32
    %98 = tpu.dynamic_rotate %84 by %c1_i32_39 dim 1 : vector<8x128xf32>, i32 -> vector<8x128xf32>
    %cst_40 = arith.constant 0.000000e+00 : f32
    %99 = vector.shape_cast %5 : vector<1x128xi1> to vector<1x128xi1>
    %100 = vector.broadcast %99 : vector<1x128xi1> to vector<8x128xi1>
    %101 = vector.broadcast %cst_40 : f32 to vector<8x128xf32>
    %102 = arith.select %100, %98, %101 : vector<8x128xi1>, vector<8x128xf32>
    %c127_i32_41 = arith.constant 127 : i32
    %103 = tpu.dynamic_rotate %84 by %c127_i32_41 dim 1 : vector<8x128xf32>, i32 -> vector<8x128xf32>
    %cst_42 = arith.constant 0.000000e+00 : f32
    %104 = vector.shape_cast %10 : vector<1x128xi1> to vector<1x128xi1>
    %105 = vector.broadcast %104 : vector<1x128xi1> to vector<8x128xi1>
    %106 = vector.broadcast %cst_42 : f32 to vector<8x128xf32>
    %107 = arith.select %105, %103, %106 : vector<8x128xi1>, vector<8x128xf32>
    %c1_i32_43 = arith.constant 1 : i32
    %108 = tpu.dynamic_rotate %85 by %c1_i32_43 dim 1 : vector<8x128xf32>, i32 -> vector<8x128xf32>
    %cst_44 = arith.constant 0.000000e+00 : f32
    %109 = vector.shape_cast %5 : vector<1x128xi1> to vector<1x128xi1>
    %110 = vector.broadcast %109 : vector<1x128xi1> to vector<8x128xi1>
    %111 = vector.broadcast %cst_44 : f32 to vector<8x128xf32>
    %112 = arith.select %110, %108, %111 : vector<8x128xi1>, vector<8x128xf32>
    %c127_i32_45 = arith.constant 127 : i32
    %113 = tpu.dynamic_rotate %85 by %c127_i32_45 dim 1 : vector<8x128xf32>, i32 -> vector<8x128xf32>
    %cst_46 = arith.constant 0.000000e+00 : f32
    %114 = vector.shape_cast %10 : vector<1x128xi1> to vector<1x128xi1>
    %115 = vector.broadcast %114 : vector<1x128xi1> to vector<8x128xi1>
    %116 = vector.broadcast %cst_46 : f32 to vector<8x128xf32>
    %117 = arith.select %115, %113, %116 : vector<8x128xi1>, vector<8x128xf32>
    %c1_i32_47 = arith.constant 1 : i32
    %118 = tpu.dynamic_rotate %86 by %c1_i32_47 dim 1 : vector<8x128xf32>, i32 -> vector<8x128xf32>
    %cst_48 = arith.constant 0.000000e+00 : f32
    %119 = vector.shape_cast %5 : vector<1x128xi1> to vector<1x128xi1>
    %120 = vector.broadcast %119 : vector<1x128xi1> to vector<8x128xi1>
    %121 = vector.broadcast %cst_48 : f32 to vector<8x128xf32>
    %122 = arith.select %120, %118, %121 : vector<8x128xi1>, vector<8x128xf32>
    %c127_i32_49 = arith.constant 127 : i32
    %123 = tpu.dynamic_rotate %86 by %c127_i32_49 dim 1 : vector<8x128xf32>, i32 -> vector<8x128xf32>
    %cst_50 = arith.constant 0.000000e+00 : f32
    %124 = vector.shape_cast %10 : vector<1x128xi1> to vector<1x128xi1>
    %125 = vector.broadcast %124 : vector<1x128xi1> to vector<8x128xi1>
    %126 = vector.broadcast %cst_50 : f32 to vector<8x128xf32>
    %127 = arith.select %125, %123, %126 : vector<8x128xi1>, vector<8x128xf32>
    %128 = tpu.concatenate %92, %83, %97 in 0 : vector<8x128xf32>, vector<8x128xf32>, vector<8x128xf32> -> vector<24x128xf32>
    %129 = arith.truncf %128 : vector<24x128xf32> to vector<24x128xbf16>
    %130 = tpu.concatenate %102, %84, %107 in 0 : vector<8x128xf32>, vector<8x128xf32>, vector<8x128xf32> -> vector<24x128xf32>
    %131 = arith.truncf %130 : vector<24x128xf32> to vector<24x128xbf16>
    %132 = tpu.concatenate %112, %85, %117 in 0 : vector<8x128xf32>, vector<8x128xf32>, vector<8x128xf32> -> vector<24x128xf32>
    %133 = arith.truncf %132 : vector<24x128xf32> to vector<24x128xbf16>
    %134 = tpu.concatenate %122, %86, %127 in 0 : vector<8x128xf32>, vector<8x128xf32>, vector<8x128xf32> -> vector<24x128xf32>
    %135 = arith.truncf %134 : vector<24x128xf32> to vector<24x128xbf16>
    %136 = tpu.concatenate %129, %131, %133, %135 in 1 : vector<24x128xbf16>, vector<24x128xbf16>, vector<24x128xbf16>, vector<24x128xbf16> -> vector<24x512xbf16>
    %c0_51 = arith.constant 0 : index
    %c0_52 = arith.constant 0 : index
    %137 = vector.load %arg4[%c0_51, %c0_52] : memref<16x24xbf16, #tpu.memory_space<vmem>>, vector<16x24xbf16>
    %cst_53 = arith.constant dense<0.000000e+00> : vector<16x512xf32>
    %138 = tpu.matmul %137, %136, %cst_53 {dimension_numbers = #tpu.dot_dimension_numbers<[1], [0], [0], [1], [0, 0, 1, 1], [], []>} : vector<16x24xbf16>, vector<24x512xbf16>, vector<16x512xf32> -> vector<16x512xf32>
    %139 = vector.broadcast %87 : vector<16x1xf32> to vector<16x512xf32>
    %140 = arith.addf %138, %139 : vector<16x512xf32>
    %141 = arith.truncf %12 : vector<8x128xf32> to vector<8x128xbf16>
    %142 = arith.truncf %14 : vector<8x128xf32> to vector<8x128xbf16>
    %143 = arith.truncf %16 : vector<8x128xf32> to vector<8x128xbf16>
    %144 = arith.truncf %18 : vector<8x128xf32> to vector<8x128xbf16>
    %145 = tpu.concatenate %141, %142, %143, %144 in 1 : vector<8x128xbf16>, vector<8x128xbf16>, vector<8x128xbf16>, vector<8x128xbf16> -> vector<8x512xbf16>
    %c0_54 = arith.constant 0 : index
    %c0_55 = arith.constant 0 : index
    %146 = vector.load %arg6[%c0_54, %c0_55] : memref<16x8xbf16, #tpu.memory_space<vmem>>, vector<16x8xbf16>
    %cst_56 = arith.constant dense<0.000000e+00> : vector<16x512xf32>
    %147 = tpu.matmul %146, %145, %cst_56 {dimension_numbers = #tpu.dot_dimension_numbers<[1], [0], [0], [1], [0, 0, 1, 1], [], []>} : vector<16x8xbf16>, vector<8x512xbf16>, vector<16x512xf32> -> vector<16x512xf32>
    %c0_57 = arith.constant 0 : index
    %c0_58 = arith.constant 0 : index
    %148 = vector.load %arg7[%c0_57, %c0_58] : memref<16x1xf32, #tpu.memory_space<vmem>>, vector<16x1xf32>
    %149 = vector.broadcast %148 : vector<16x1xf32> to vector<16x512xf32>
    %150 = arith.addf %147, %149 : vector<16x512xf32>
    %151 = arith.addf %140, %150 : vector<16x512xf32>
    %152 = vector.extract_strided_slice %151 {offsets = [0, 0], sizes = [16, 128], strides = [1, 1]} : vector<16x512xf32> to vector<16x128xf32>
    %c0_59 = arith.constant 0 : index
    %c0_60 = arith.constant 0 : index
    %c0_61 = arith.constant 0 : index
    %153 = vector.load %arg8[%c0_59, %c0_60, %c0_61] : memref<4x16x128xf32, #tpu.memory_space<vmem>>, vector<1x16x128xf32>
    %154 = vector.shape_cast %153 : vector<1x16x128xf32> to vector<16x128xf32>
    %155 = vector.shape_cast %152 : vector<16x128xf32> to vector<1x16x128xf32>
    tpu.vector_store %arg8[%c0_59, %c0_60, %c0_61], %155 {strides = array<i32>} : memref<4x16x128xf32, #tpu.memory_space<vmem>>, vector<1x16x128xf32>,
    %156 = vector.extract_strided_slice %151 {offsets = [0, 128], sizes = [16, 128], strides = [1, 1]} : vector<16x512xf32> to vector<16x128xf32>
    %c1_62 = arith.constant 1 : index
    %c0_63 = arith.constant 0 : index
    %c0_64 = arith.constant 0 : index
    %157 = vector.load %arg8[%c1_62, %c0_63, %c0_64] : memref<4x16x128xf32, #tpu.memory_space<vmem>>, vector<1x16x128xf32>
    %158 = vector.shape_cast %157 : vector<1x16x128xf32> to vector<16x128xf32>
    %159 = vector.shape_cast %156 : vector<16x128xf32> to vector<1x16x128xf32>
    tpu.vector_store %arg8[%c1_62, %c0_63, %c0_64], %159 {strides = array<i32>} : memref<4x16x128xf32, #tpu.memory_space<vmem>>, vector<1x16x128xf32>,
    %160 = vector.extract_strided_slice %151 {offsets = [0, 256], sizes = [16, 128], strides = [1, 1]} : vector<16x512xf32> to vector<16x128xf32>
    %c2_65 = arith.constant 2 : index
    %c0_66 = arith.constant 0 : index
    %c0_67 = arith.constant 0 : index
    %161 = vector.load %arg8[%c2_65, %c0_66, %c0_67] : memref<4x16x128xf32, #tpu.memory_space<vmem>>, vector<1x16x128xf32>
    %162 = vector.shape_cast %161 : vector<1x16x128xf32> to vector<16x128xf32>
    %163 = vector.shape_cast %160 : vector<16x128xf32> to vector<1x16x128xf32>
    tpu.vector_store %arg8[%c2_65, %c0_66, %c0_67], %163 {strides = array<i32>} : memref<4x16x128xf32, #tpu.memory_space<vmem>>, vector<1x16x128xf32>,
    %164 = vector.extract_strided_slice %151 {offsets = [0, 384], sizes = [16, 128], strides = [1, 1]} : vector<16x512xf32> to vector<16x128xf32>
    %c3_68 = arith.constant 3 : index
    %c0_69 = arith.constant 0 : index
    %c0_70 = arith.constant 0 : index
    %165 = vector.load %arg8[%c3_68, %c0_69, %c0_70] : memref<4x16x128xf32, #tpu.memory_space<vmem>>, vector<1x16x128xf32>
    %166 = vector.shape_cast %165 : vector<1x16x128xf32> to vector<16x128xf32>
    %167 = vector.shape_cast %164 : vector<16x128xf32> to vector<1x16x128xf32>
    tpu.vector_store %arg8[%c3_68, %c0_69, %c0_70], %167 {strides = array<i32>} : memref<4x16x128xf32, #tpu.memory_space<vmem>>, vector<1x16x128xf32>,
    return
  }
  func.func @transform_0(%arg0: i32) -> (i32, i32, i32) {
    %c0_i32 = arith.constant 0 : i32
    %c0_i32_0 = arith.constant 0 : i32
    %c0_i32_1 = arith.constant 0 : i32
    return %arg0, %c0_i32, %c0_i32_0 : i32, i32, i32
  }
  func.func @transform_1(%arg0: i32) -> (i32, i32) {
    %c0_i32 = arith.constant 0 : i32
    %c0_i32_0 = arith.constant 0 : i32
    %c0_i32_1 = arith.constant 0 : i32
    return %c0_i32, %c0_i32_0 : i32, i32
  }
  func.func @transform_2(%arg0: i32) -> (i32, i32) {
    %c0_i32 = arith.constant 0 : i32
    %c0_i32_0 = arith.constant 0 : i32
    %c0_i32_1 = arith.constant 0 : i32
    return %c0_i32, %c0_i32_0 : i32, i32
  }
  func.func @transform_3(%arg0: i32) -> (i32, i32) {
    %c0_i32 = arith.constant 0 : i32
    %c0_i32_0 = arith.constant 0 : i32
    %c0_i32_1 = arith.constant 0 : i32
    return %c0_i32, %c0_i32_0 : i32, i32
  }
  func.func @transform_4(%arg0: i32) -> (i32, i32) {
    %c0_i32 = arith.constant 0 : i32
    %c0_i32_0 = arith.constant 0 : i32
    %c0_i32_1 = arith.constant 0 : i32
    return %c0_i32, %c0_i32_0 : i32, i32
  }
  func.func @transform_5(%arg0: i32) -> (i32, i32) {
    %c0_i32 = arith.constant 0 : i32
    %c0_i32_0 = arith.constant 0 : i32
    %c0_i32_1 = arith.constant 0 : i32
    return %c0_i32, %c0_i32_0 : i32, i32
  }
  func.func @transform_6(%arg0: i32) -> (i32, i32) {
    %c0_i32 = arith.constant 0 : i32
    %c0_i32_0 = arith.constant 0 : i32
    %c0_i32_1 = arith.constant 0 : i32
    return %c0_i32, %c0_i32_0 : i32, i32
  }
  func.func @transform_7(%arg0: i32) -> (i32, i32, i32) {
    %c0_i32 = arith.constant 0 : i32
    %c0_i32_0 = arith.constant 0 : i32
    %c0_i32_1 = arith.constant 0 : i32
    return %arg0, %c0_i32, %c0_i32_0 : i32, i32, i32
  }
}

module attributes {stable_mosaic.version = 11 : i64} {
  func.func @kernel(%arg0: i32, %arg1: memref<4x8x128xf32, #tpu.memory_space<vmem>>, %arg2: memref<8x24xbf16, #tpu.memory_space<vmem>>, %arg3: memref<8x1xf32, #tpu.memory_space<vmem>>, %arg4: memref<16x24xbf16, #tpu.memory_space<vmem>>, %arg5: memref<16x1xf32, #tpu.memory_space<vmem>>, %arg6: memref<16x8xbf16, #tpu.memory_space<vmem>>, %arg7: memref<16x1xf32, #tpu.memory_space<vmem>>, %arg8: memref<4x16x128xf32, #tpu.memory_space<vmem>>) attributes {dimension_semantics = [#tpu.dimension_semantics<parallel>], iteration_bounds = array<i64: 2>, scalar_prefetch = 0 : i64, scratch_operands = 0 : i64, tpu.core_type = #tpu.core_type<tc>, window_params = [{transform_indices = @transform_0, window_bounds = array<i64: 4, 8, 128>}, {pipeline_mode = #tpu.pipeline_mode<synchronous>, transform_indices = @transform_1, window_bounds = array<i64: 8, 24>}, {pipeline_mode = #tpu.pipeline_mode<synchronous>, transform_indices = @transform_2, window_bounds = array<i64: 8, 1>}, {pipeline_mode = #tpu.pipeline_mode<synchronous>, transform_indices = @transform_3, window_bounds = array<i64: 16, 24>}, {pipeline_mode = #tpu.pipeline_mode<synchronous>, transform_indices = @transform_4, window_bounds = array<i64: 16, 1>}, {pipeline_mode = #tpu.pipeline_mode<synchronous>, transform_indices = @transform_5, window_bounds = array<i64: 16, 8>}, {pipeline_mode = #tpu.pipeline_mode<synchronous>, transform_indices = @transform_6, window_bounds = array<i64: 16, 1>}, {transform_indices = @transform_7, window_bounds = array<i64: 4, 16, 128>}]} {
    %0 = tpu.iota {dimensions = array<i32: 1>} : vector<1x128xi32>
    %c1_i32 = arith.constant 1 : i32
    %1 = vector.broadcast %c1_i32 : i32 to vector<1x128xi32>
    %2 = arith.cmpi sge, %0, %1 : vector<1x128xi32>
    %c129_i32 = arith.constant 129 : i32
    %3 = vector.broadcast %c129_i32 : i32 to vector<1x128xi32>
    %4 = arith.cmpi slt, %0, %3 : vector<1x128xi32>
    %5 = arith.andi %2, %4 : vector<1x128xi1>
    %c-1_i32 = arith.constant -1 : i32
    %6 = vector.broadcast %c-1_i32 : i32 to vector<1x128xi32>
    %7 = arith.cmpi sge, %0, %6 : vector<1x128xi32>
    %c127_i32 = arith.constant 127 : i32
    %8 = vector.broadcast %c127_i32 : i32 to vector<1x128xi32>
    %9 = arith.cmpi slt, %0, %8 : vector<1x128xi32>
    %10 = arith.andi %7, %9 : vector<1x128xi1>
    %c0 = arith.constant 0 : index
    %c0_0 = arith.constant 0 : index
    %c0_1 = arith.constant 0 : index
    %11 = vector.load %arg1[%c0, %c0_0, %c0_1] : memref<4x8x128xf32, #tpu.memory_space<vmem>>, vector<1x8x128xf32>
    %12 = vector.shape_cast %11 : vector<1x8x128xf32> to vector<8x128xf32>
    %c1 = arith.constant 1 : index
    %c0_2 = arith.constant 0 : index
    %c0_3 = arith.constant 0 : index
    %13 = vector.load %arg1[%c1, %c0_2, %c0_3] : memref<4x8x128xf32, #tpu.memory_space<vmem>>, vector<1x8x128xf32>
    %14 = vector.shape_cast %13 : vector<1x8x128xf32> to vector<8x128xf32>
    %c2 = arith.constant 2 : index
    %c0_4 = arith.constant 0 : index
    %c0_5 = arith.constant 0 : index
    %15 = vector.load %arg1[%c2, %c0_4, %c0_5] : memref<4x8x128xf32, #tpu.memory_space<vmem>>, vector<1x8x128xf32>
    %16 = vector.shape_cast %15 : vector<1x8x128xf32> to vector<8x128xf32>
    %c3 = arith.constant 3 : index
    %c0_6 = arith.constant 0 : index
    %c0_7 = arith.constant 0 : index
    %17 = vector.load %arg1[%c3, %c0_6, %c0_7] : memref<4x8x128xf32, #tpu.memory_space<vmem>>, vector<1x8x128xf32>
    %18 = vector.shape_cast %17 : vector<1x8x128xf32> to vector<8x128xf32>
    %cst = arith.constant 0.000000e+00 : f32
    %19 = vector.broadcast %cst : f32 to vector<8x128xf32>
    %20 = arith.maximumf %12, %19 : vector<8x128xf32>
    %cst_8 = arith.constant 0.000000e+00 : f32
    %21 = vector.broadcast %cst_8 : f32 to vector<8x128xf32>
    %22 = arith.maximumf %14, %21 : vector<8x128xf32>
    %cst_9 = arith.constant 0.000000e+00 : f32
    %23 = vector.broadcast %cst_9 : f32 to vector<8x128xf32>
    %24 = arith.maximumf %16, %23 : vector<8x128xf32>
    %cst_10 = arith.constant 0.000000e+00 : f32
    %25 = vector.broadcast %cst_10 : f32 to vector<8x128xf32>
    %26 = arith.maximumf %18, %25 : vector<8x128xf32>
    %c0_11 = arith.constant 0 : index
    %c0_12 = arith.constant 0 : index
    %27 = vector.load %arg3[%c0_11, %c0_12] : memref<8x1xf32, #tpu.memory_space<vmem>>, vector<8x1xf32>
    %c1_i32_13 = arith.constant 1 : i32
    %28 = tpu.dynamic_rotate %20 by %c1_i32_13 dim 1 : vector<8x128xf32>, i32 -> vector<8x128xf32>
    %cst_14 = arith.constant 0.000000e+00 : f32
    %29 = vector.shape_cast %5 : vector<1x128xi1> to vector<1x128xi1>
    %30 = vector.broadcast %29 : vector<1x128xi1> to vector<8x128xi1>
    %31 = vector.broadcast %cst_14 : f32 to vector<8x128xf32>
    %32 = arith.select %30, %28, %31 : vector<8x128xi1>, vector<8x128xf32>
    %c127_i32_15 = arith.constant 127 : i32
    %33 = tpu.dynamic_rotate %20 by %c127_i32_15 dim 1 : vector<8x128xf32>, i32 -> vector<8x128xf32>
    %cst_16 = arith.constant 0.000000e+00 : f32
    %34 = vector.shape_cast %10 : vector<1x128xi1> to vector<1x128xi1>
    %35 = vector.broadcast %34 : vector<1x128xi1> to vector<8x128xi1>
    %36 = vector.broadcast %cst_16 : f32 to vector<8x128xf32>
    %37 = arith.select %35, %33, %36 : vector<8x128xi1>, vector<8x128xf32>
    %c1_i32_17 = arith.constant 1 : i32
    %38 = tpu.dynamic_rotate %22 by %c1_i32_17 dim 1 : vector<8x128xf32>, i32 -> vector<8x128xf32>
    %cst_18 = arith.constant 0.000000e+00 : f32
    %39 = vector.shape_cast %5 : vector<1x128xi1> to vector<1x128xi1>
    %40 = vector.broadcast %39 : vector<1x128xi1> to vector<8x128xi1>
    %41 = vector.broadcast %cst_18 : f32 to vector<8x128xf32>
    %42 = arith.select %40, %38, %41 : vector<8x128xi1>, vector<8x128xf32>
    %c127_i32_19 = arith.constant 127 : i32
    %43 = tpu.dynamic_rotate %22 by %c127_i32_19 dim 1 : vector<8x128xf32>, i32 -> vector<8x128xf32>
    %cst_20 = arith.constant 0.000000e+00 : f32
    %44 = vector.shape_cast %10 : vector<1x128xi1> to vector<1x128xi1>
    %45 = vector.broadcast %44 : vector<1x128xi1> to vector<8x128xi1>
    %46 = vector.broadcast %cst_20 : f32 to vector<8x128xf32>
    %47 = arith.select %45, %43, %46 : vector<8x128xi1>, vector<8x128xf32>
    %c1_i32_21 = arith.constant 1 : i32
    %48 = tpu.dynamic_rotate %24 by %c1_i32_21 dim 1 : vector<8x128xf32>, i32 -> vector<8x128xf32>
    %cst_22 = arith.constant 0.000000e+00 : f32
    %49 = vector.shape_cast %5 : vector<1x128xi1> to vector<1x128xi1>
    %50 = vector.broadcast %49 : vector<1x128xi1> to vector<8x128xi1>
    %51 = vector.broadcast %cst_22 : f32 to vector<8x128xf32>
    %52 = arith.select %50, %48, %51 : vector<8x128xi1>, vector<8x128xf32>
    %c127_i32_23 = arith.constant 127 : i32
    %53 = tpu.dynamic_rotate %24 by %c127_i32_23 dim 1 : vector<8x128xf32>, i32 -> vector<8x128xf32>
    %cst_24 = arith.constant 0.000000e+00 : f32
    %54 = vector.shape_cast %10 : vector<1x128xi1> to vector<1x128xi1>
    %55 = vector.broadcast %54 : vector<1x128xi1> to vector<8x128xi1>
    %56 = vector.broadcast %cst_24 : f32 to vector<8x128xf32>
    %57 = arith.select %55, %53, %56 : vector<8x128xi1>, vector<8x128xf32>
    %c1_i32_25 = arith.constant 1 : i32
    %58 = tpu.dynamic_rotate %26 by %c1_i32_25 dim 1 : vector<8x128xf32>, i32 -> vector<8x128xf32>
    %cst_26 = arith.constant 0.000000e+00 : f32
    %59 = vector.shape_cast %5 : vector<1x128xi1> to vector<1x128xi1>
    %60 = vector.broadcast %59 : vector<1x128xi1> to vector<8x128xi1>
    %61 = vector.broadcast %cst_26 : f32 to vector<8x128xf32>
    %62 = arith.select %60, %58, %61 : vector<8x128xi1>, vector<8x128xf32>
    %c127_i32_27 = arith.constant 127 : i32
    %63 = tpu.dynamic_rotate %26 by %c127_i32_27 dim 1 : vector<8x128xf32>, i32 -> vector<8x128xf32>
    %cst_28 = arith.constant 0.000000e+00 : f32
    %64 = vector.shape_cast %10 : vector<1x128xi1> to vector<1x128xi1>
    %65 = vector.broadcast %64 : vector<1x128xi1> to vector<8x128xi1>
    %66 = vector.broadcast %cst_28 : f32 to vector<8x128xf32>
    %67 = arith.select %65, %63, %66 : vector<8x128xi1>, vector<8x128xf32>
    %68 = tpu.concatenate %32, %20, %37 in 0 : vector<8x128xf32>, vector<8x128xf32>, vector<8x128xf32> -> vector<24x128xf32>
    %69 = arith.truncf %68 : vector<24x128xf32> to vector<24x128xbf16>
    %70 = tpu.concatenate %42, %22, %47 in 0 : vector<8x128xf32>, vector<8x128xf32>, vector<8x128xf32> -> vector<24x128xf32>
    %71 = arith.truncf %70 : vector<24x128xf32> to vector<24x128xbf16>
    %72 = tpu.concatenate %52, %24, %57 in 0 : vector<8x128xf32>, vector<8x128xf32>, vector<8x128xf32> -> vector<24x128xf32>
    %73 = arith.truncf %72 : vector<24x128xf32> to vector<24x128xbf16>
    %74 = tpu.concatenate %62, %26, %67 in 0 : vector<8x128xf32>, vector<8x128xf32>, vector<8x128xf32> -> vector<24x128xf32>
    %75 = arith.truncf %74 : vector<24x128xf32> to vector<24x128xbf16>
    %76 = tpu.concatenate %69, %71, %73, %75 in 1 : vector<24x128xbf16>, vector<24x128xbf16>, vector<24x128xbf16>, vector<24x128xbf16> -> vector<24x512xbf16>
    %c0_29 = arith.constant 0 : index
    %c0_30 = arith.constant 0 : index
    %77 = vector.load %arg2[%c0_29, %c0_30] : memref<8x24xbf16, #tpu.memory_space<vmem>>, vector<8x24xbf16>
    %cst_31 = arith.constant dense<0.000000e+00> : vector<8x512xf32>
    %78 = tpu.matmul %77, %76, %cst_31 {dimension_numbers = #tpu.dot_dimension_numbers<[1], [0], [0], [1], [0, 0, 1, 1], [], []>} : vector<8x24xbf16>, vector<24x512xbf16>, vector<8x512xf32> -> vector<8x512xf32>
    %79 = vector.broadcast %27 : vector<8x1xf32> to vector<8x512xf32>
    %80 = arith.addf %78, %79 : vector<8x512xf32>
    %cst_32 = arith.constant 0.000000e+00 : f32
    %81 = vector.broadcast %cst_32 : f32 to vector<8x512xf32>
    %82 = arith.maximumf %80, %81 : vector<8x512xf32>
    %83 = vector.extract_strided_slice %82 {offsets = [0, 0], sizes = [8, 128], strides = [1, 1]} : vector<8x512xf32> to vector<8x128xf32>
    %84 = vector.extract_strided_slice %82 {offsets = [0, 128], sizes = [8, 128], strides = [1, 1]} : vector<8x512xf32> to vector<8x128xf32>
    %85 = vector.extract_strided_slice %82 {offsets = [0, 256], sizes = [8, 128], strides = [1, 1]} : vector<8x512xf32> to vector<8x128xf32>
    %86 = vector.extract_strided_slice %82 {offsets = [0, 384], sizes = [8, 128], strides = [1, 1]} : vector<8x512xf32> to vector<8x128xf32>
    %c0_33 = arith.constant 0 : index
    %c0_34 = arith.constant 0 : index
    %87 = vector.load %arg5[%c0_33, %c0_34] : memref<16x1xf32, #tpu.memory_space<vmem>>, vector<16x1xf32>
    %c1_i32_35 = arith.constant 1 : i32
    %88 = tpu.dynamic_rotate %83 by %c1_i32_35 dim 1 : vector<8x128xf32>, i32 -> vector<8x128xf32>
    %cst_36 = arith.constant 0.000000e+00 : f32
    %89 = vector.shape_cast %5 : vector<1x128xi1> to vector<1x128xi1>
    %90 = vector.broadcast %89 : vector<1x128xi1> to vector<8x128xi1>
    %91 = vector.broadcast %cst_36 : f32 to vector<8x128xf32>
    %92 = arith.select %90, %88, %91 : vector<8x128xi1>, vector<8x128xf32>
    %c127_i32_37 = arith.constant 127 : i32
    %93 = tpu.dynamic_rotate %83 by %c127_i32_37 dim 1 : vector<8x128xf32>, i32 -> vector<8x128xf32>
    %cst_38 = arith.constant 0.000000e+00 : f32
    %94 = vector.shape_cast %10 : vector<1x128xi1> to vector<1x128xi1>
    %95 = vector.broadcast %94 : vector<1x128xi1> to vector<8x128xi1>
    %96 = vector.broadcast %cst_38 : f32 to vector<8x128xf32>
    %97 = arith.select %95, %93, %96 : vector<8x128xi1>, vector<8x128xf32>
    %c1_i32_39 = arith.constant 1 : i32
    %98 = tpu.dynamic_rotate %84 by %c1_i32_39 dim 1 : vector<8x128xf32>, i32 -> vector<8x128xf32>
    %cst_40 = arith.constant 0.000000e+00 : f32
    %99 = vector.shape_cast %5 : vector<1x128xi1> to vector<1x128xi1>
    %100 = vector.broadcast %99 : vector<1x128xi1> to vector<8x128xi1>
    %101 = vector.broadcast %cst_40 : f32 to vector<8x128xf32>
    %102 = arith.select %100, %98, %101 : vector<8x128xi1>, vector<8x128xf32>
    %c127_i32_41 = arith.constant 127 : i32
    %103 = tpu.dynamic_rotate %84 by %c127_i32_41 dim 1 : vector<8x128xf32>, i32 -> vector<8x128xf32>
    %cst_42 = arith.constant 0.000000e+00 : f32
    %104 = vector.shape_cast %10 : vector<1x128xi1> to vector<1x128xi1>
    %105 = vector.broadcast %104 : vector<1x128xi1> to vector<8x128xi1>
    %106 = vector.broadcast %cst_42 : f32 to vector<8x128xf32>
    %107 = arith.select %105, %103, %106 : vector<8x128xi1>, vector<8x128xf32>
    %c1_i32_43 = arith.constant 1 : i32
    %108 = tpu.dynamic_rotate %85 by %c1_i32_43 dim 1 : vector<8x128xf32>, i32 -> vector<8x128xf32>
    %cst_44 = arith.constant 0.000000e+00 : f32
    %109 = vector.shape_cast %5 : vector<1x128xi1> to vector<1x128xi1>
    %110 = vector.broadcast %109 : vector<1x128xi1> to vector<8x128xi1>
    %111 = vector.broadcast %cst_44 : f32 to vector<8x128xf32>
    %112 = arith.select %110, %108, %111 : vector<8x128xi1>, vector<8x128xf32>
    %c127_i32_45 = arith.constant 127 : i32
    %113 = tpu.dynamic_rotate %85 by %c127_i32_45 dim 1 : vector<8x128xf32>, i32 -> vector<8x128xf32>
    %cst_46 = arith.constant 0.000000e+00 : f32
    %114 = vector.shape_cast %10 : vector<1x128xi1> to vector<1x128xi1>
    %115 = vector.broadcast %114 : vector<1x128xi1> to vector<8x128xi1>
    %116 = vector.broadcast %cst_46 : f32 to vector<8x128xf32>
    %117 = arith.select %115, %113, %116 : vector<8x128xi1>, vector<8x128xf32>
    %c1_i32_47 = arith.constant 1 : i32
    %118 = tpu.dynamic_rotate %86 by %c1_i32_47 dim 1 : vector<8x128xf32>, i32 -> vector<8x128xf32>
    %cst_48 = arith.constant 0.000000e+00 : f32
    %119 = vector.shape_cast %5 : vector<1x128xi1> to vector<1x128xi1>
    %120 = vector.broadcast %119 : vector<1x128xi1> to vector<8x128xi1>
    %121 = vector.broadcast %cst_48 : f32 to vector<8x128xf32>
    %122 = arith.select %120, %118, %121 : vector<8x128xi1>, vector<8x128xf32>
    %c127_i32_49 = arith.constant 127 : i32
    %123 = tpu.dynamic_rotate %86 by %c127_i32_49 dim 1 : vector<8x128xf32>, i32 -> vector<8x128xf32>
    %cst_50 = arith.constant 0.000000e+00 : f32
    %124 = vector.shape_cast %10 : vector<1x128xi1> to vector<1x128xi1>
    %125 = vector.broadcast %124 : vector<1x128xi1> to vector<8x128xi1>
    %126 = vector.broadcast %cst_50 : f32 to vector<8x128xf32>
    %127 = arith.select %125, %123, %126 : vector<8x128xi1>, vector<8x128xf32>
    %128 = tpu.concatenate %92, %83, %97 in 0 : vector<8x128xf32>, vector<8x128xf32>, vector<8x128xf32> -> vector<24x128xf32>
    %129 = arith.truncf %128 : vector<24x128xf32> to vector<24x128xbf16>
    %130 = tpu.concatenate %102, %84, %107 in 0 : vector<8x128xf32>, vector<8x128xf32>, vector<8x128xf32> -> vector<24x128xf32>
    %131 = arith.truncf %130 : vector<24x128xf32> to vector<24x128xbf16>
    %132 = tpu.concatenate %112, %85, %117 in 0 : vector<8x128xf32>, vector<8x128xf32>, vector<8x128xf32> -> vector<24x128xf32>
    %133 = arith.truncf %132 : vector<24x128xf32> to vector<24x128xbf16>
    %134 = tpu.concatenate %122, %86, %127 in 0 : vector<8x128xf32>, vector<8x128xf32>, vector<8x128xf32> -> vector<24x128xf32>
    %135 = arith.truncf %134 : vector<24x128xf32> to vector<24x128xbf16>
    %136 = tpu.concatenate %129, %131, %133, %135 in 1 : vector<24x128xbf16>, vector<24x128xbf16>, vector<24x128xbf16>, vector<24x128xbf16> -> vector<24x512xbf16>
    %c0_51 = arith.constant 0 : index
    %c0_52 = arith.constant 0 : index
    %137 = vector.load %arg4[%c0_51, %c0_52] : memref<16x24xbf16, #tpu.memory_space<vmem>>, vector<16x24xbf16>
    %cst_53 = arith.constant dense<0.000000e+00> : vector<16x512xf32>
    %138 = tpu.matmul %137, %136, %cst_53 {dimension_numbers = #tpu.dot_dimension_numbers<[1], [0], [0], [1], [0, 0, 1, 1], [], []>} : vector<16x24xbf16>, vector<24x512xbf16>, vector<16x512xf32> -> vector<16x512xf32>
    %139 = vector.broadcast %87 : vector<16x1xf32> to vector<16x512xf32>
    %140 = arith.addf %138, %139 : vector<16x512xf32>
    %141 = arith.truncf %12 : vector<8x128xf32> to vector<8x128xbf16>
    %142 = arith.truncf %14 : vector<8x128xf32> to vector<8x128xbf16>
    %143 = arith.truncf %16 : vector<8x128xf32> to vector<8x128xbf16>
    %144 = arith.truncf %18 : vector<8x128xf32> to vector<8x128xbf16>
    %145 = tpu.concatenate %141, %142, %143, %144 in 1 : vector<8x128xbf16>, vector<8x128xbf16>, vector<8x128xbf16>, vector<8x128xbf16> -> vector<8x512xbf16>
    %c0_54 = arith.constant 0 : index
    %c0_55 = arith.constant 0 : index
    %146 = vector.load %arg6[%c0_54, %c0_55] : memref<16x8xbf16, #tpu.memory_space<vmem>>, vector<16x8xbf16>
    %cst_56 = arith.constant dense<0.000000e+00> : vector<16x512xf32>
    %147 = tpu.matmul %146, %145, %cst_56 {dimension_numbers = #tpu.dot_dimension_numbers<[1], [0], [0], [1], [0, 0, 1, 1], [], []>} : vector<16x8xbf16>, vector<8x512xbf16>, vector<16x512xf32> -> vector<16x512xf32>
    %c0_57 = arith.constant 0 : index
    %c0_58 = arith.constant 0 : index
    %148 = vector.load %arg7[%c0_57, %c0_58] : memref<16x1xf32, #tpu.memory_space<vmem>>, vector<16x1xf32>
    %149 = vector.broadcast %148 : vector<16x1xf32> to vector<16x512xf32>
    %150 = arith.addf %147, %149 : vector<16x512xf32>
    %151 = arith.addf %140, %150 : vector<16x512xf32>
    %152 = vector.extract_strided_slice %151 {offsets = [0, 0], sizes = [16, 128], strides = [1, 1]} : vector<16x512xf32> to vector<16x128xf32>
    %c0_59 = arith.constant 0 : index
    %c0_60 = arith.constant 0 : index
    %c0_61 = arith.constant 0 : index
    %153 = vector.load %arg8[%c0_59, %c0_60, %c0_61] : memref<4x16x128xf32, #tpu.memory_space<vmem>>, vector<1x16x128xf32>
    %154 = vector.shape_cast %153 : vector<1x16x128xf32> to vector<16x128xf32>
    %155 = vector.shape_cast %152 : vector<16x128xf32> to vector<1x16x128xf32>
    tpu.vector_store %arg8[%c0_59, %c0_60, %c0_61], %155 {strides = array<i32>} : memref<4x16x128xf32, #tpu.memory_space<vmem>>, vector<1x16x128xf32>,
    %156 = vector.extract_strided_slice %151 {offsets = [0, 128], sizes = [16, 128], strides = [1, 1]} : vector<16x512xf32> to vector<16x128xf32>
    %c1_62 = arith.constant 1 : index
    %c0_63 = arith.constant 0 : index
    %c0_64 = arith.constant 0 : index
    %157 = vector.load %arg8[%c1_62, %c0_63, %c0_64] : memref<4x16x128xf32, #tpu.memory_space<vmem>>, vector<1x16x128xf32>
    %158 = vector.shape_cast %157 : vector<1x16x128xf32> to vector<16x128xf32>
    %159 = vector.shape_cast %156 : vector<16x128xf32> to vector<1x16x128xf32>
    tpu.vector_store %arg8[%c1_62, %c0_63, %c0_64], %159 {strides = array<i32>} : memref<4x16x128xf32, #tpu.memory_space<vmem>>, vector<1x16x128xf32>,
    %160 = vector.extract_strided_slice %151 {offsets = [0, 256], sizes = [16, 128], strides = [1, 1]} : vector<16x512xf32> to vector<16x128xf32>
    %c2_65 = arith.constant 2 : index
    %c0_66 = arith.constant 0 : index
    %c0_67 = arith.constant 0 : index
    %161 = vector.load %arg8[%c2_65, %c0_66, %c0_67] : memref<4x16x128xf32, #tpu.memory_space<vmem>>, vector<1x16x128xf32>
    %162 = vector.shape_cast %161 : vector<1x16x128xf32> to vector<16x128xf32>
    %163 = vector.shape_cast %160 : vector<16x128xf32> to vector<1x16x128xf32>
    tpu.vector_store %arg8[%c2_65, %c0_66, %c0_67], %163 {strides = array<i32>} : memref<4x16x128xf32, #tpu.memory_space<vmem>>, vector<1x16x128xf32>,
    %164 = vector.extract_strided_slice %151 {offsets = [0, 384], sizes = [16, 128], strides = [1, 1]} : vector<16x512xf32> to vector<16x128xf32>
    %c3_68 = arith.constant 3 : index
    %c0_69 = arith.constant 0 : index
    %c0_70 = arith.constant 0 : index
    %165 = vector.load %arg8[%c3_68, %c0_69, %c0_70] : memref<4x16x128xf32, #tpu.memory_space<vmem>>, vector<1x16x128xf32>
    %166 = vector.shape_cast %165 : vector<1x16x128xf32> to vector<16x128xf32>
    %167 = vector.shape_cast %164 : vector<16x128xf32> to vector<1x16x128xf32>
    tpu.vector_store %arg8[%c3_68, %c0_69, %c0_70], %167 {strides = array<i32>} : memref<4x16x128xf32, #tpu.memory_space<vmem>>, vector<1x16x128xf32>,
    return
  }
  func.func @transform_0(%arg0: i32) -> (i32, i32, i32) {
    %c0_i32 = arith.constant 0 : i32
    %c0_i32_0 = arith.constant 0 : i32
    %c0_i32_1 = arith.constant 0 : i32
    return %arg0, %c0_i32, %c0_i32_0 : i32, i32, i32
  }
  func.func @transform_1(%arg0: i32) -> (i32, i32) {
    %c0_i32 = arith.constant 0 : i32
    %c0_i32_0 = arith.constant 0 : i32
    %c0_i32_1 = arith.constant 0 : i32
    return %c0_i32, %c0_i32_0 : i32, i32
  }
  func.func @transform_2(%arg0: i32) -> (i32, i32) {
    %c0_i32 = arith.constant 0 : i32
    %c0_i32_0 = arith.constant 0 : i32
    %c0_i32_1 = arith.constant 0 : i32
    return %c0_i32, %c0_i32_0 : i32, i32
  }
  func.func @transform_3(%arg0: i32) -> (i32, i32) {
    %c0_i32 = arith.constant 0 : i32
    %c0_i32_0 = arith.constant 0 : i32
    %c0_i32_1 = arith.constant 0 : i32
    return %c0_i32, %c0_i32_0 : i32, i32
  }
  func.func @transform_4(%arg0: i32) -> (i32, i32) {
    %c0_i32 = arith.constant 0 : i32
    %c0_i32_0 = arith.constant 0 : i32
    %c0_i32_1 = arith.constant 0 : i32
    return %c0_i32, %c0_i32_0 : i32, i32
  }
  func.func @transform_5(%arg0: i32) -> (i32, i32) {
    %c0_i32 = arith.constant 0 : i32
    %c0_i32_0 = arith.constant 0 : i32
    %c0_i32_1 = arith.constant 0 : i32
    return %c0_i32, %c0_i32_0 : i32, i32
  }
  func.func @transform_6(%arg0: i32) -> (i32, i32) {
    %c0_i32 = arith.constant 0 : i32
    %c0_i32_0 = arith.constant 0 : i32
    %c0_i32_1 = arith.constant 0 : i32
    return %c0_i32, %c0_i32_0 : i32, i32
  }
  func.func @transform_7(%arg0: i32) -> (i32, i32, i32) {
    %c0_i32 = arith.constant 0 : i32
    %c0_i32_0 = arith.constant 0 : i32
    %c0_i32_1 = arith.constant 0 : i32
    return %arg0, %c0_i32, %c0_i32_0 : i32, i32, i32
  }
}

</mosaic_0001>

<bundles_post_ra>
// kernel: tpu_custom_call.1
= control target key start
LH: loop header
LB: loop body
LE: loop exit
PB: predicated region body
PF: predicated region fallthrough
CT: control target
= control target key end

     0   :  { %12 = vsyncpa [#allocation3], 0  ;;  %s1427_s0 = inlined_call_operand.hbm [shape: f32[8,8,128], index: 0, kind: input, shape index: {}]   ;;  %s1428_s1 = inlined_call_operand.vmem [shape: bf16[8,24], index: 1, kind: input, shape index: {}]   ;;  %s1429_s2 = inlined_call_operand.vmem [shape: f32[8,1], index: 2, kind: input, shape index: {}]   ;;  %s1430_s3 = inlined_call_operand.vmem [shape: bf16[16,24], index: 3, kind: input, shape index: {}]   ;;  %s1431_s4 = inlined_call_operand.vmem [shape: f32[16,1], index: 4, kind: input, shape index: {}]   ;;  %s1432_s5 = inlined_call_operand.vmem [shape: bf16[16,8], index: 5, kind: input, shape index: {}]   ;;  %s1433_s6 = inlined_call_operand.vmem [shape: f32[16,1], index: 6, kind: input, shape index: {}]   ;;  %s1434_s7 = inlined_call_operand.hbm [shape: f32[8,16,128], index: 7, kind: output, shape index: {}]  }
   0x1   :  { %14 = vsyncpa [#allocation3 + $0x1], 0 }
   0x2   :  { %15 = vsyncpa [#allocation4], 0 }
   0x3   :  { %17 = vsyncpa [#allocation4 + $0x1], 0  ;;  %s1156_s24 = smov 0   ;;  %s1158_s25 = smov 0  }
   0x4   :  { %s1160_s26 = smov 0   ;;  %s1162_s27 = smov 0  }
   0x5 LB: > { %s1177_s28 = sadd.s32 4294967295, %s1104_s27   ;;  %s849_s29 = sadd.s32 4294967294, %s1104_s27   ;;  %s1104_s27 = sphi %s1162_s27, %s1451_s27   ;;  %s1100_s26 = sphi %s1160_s26, %s1450_s26   ;;  %s1096_s25 = sphi %s1158_s25, %s1449_s25   ;;  %s1092_s24 = sphi %s1156_s24, %s1448_s24  }
   0x6   : > { %s1181_s30 = sadd.s32 1, %s1104_s27   ;;  %s30_s8 = sadd.s32 1, %s1100_s26 }
   0x7   : > { %s27_s9 = ssub.s32 %s1104_s27, %s1181_s30  ;;  %p37_p0 = scmp.ne.s32.totalorder %s1100_s26, %s1096_s25 }
   0x8   : > { %p28_p1 = scmp.eq.s32.totalorder %s27_s9, 0  ;;  %p38_p2 = scmp.eq.s32.totalorder %s1104_s27, 0 }
   0x9   : > { %p43_p3 = scmp.ne.s32.totalorder %s1096_s25, %s1092_s24  ;;  %p44_p4 = scmp.eq.s32.totalorder %s1177_s28, 0 }
   0xa   : > { %s1193_s10 = scalar_select %p28_p1, %s1100_s26, %s30_s8  }
   0xb   : > { %p1195_p5 = por %p38_p2, %p37_p0  ;;  %p1199_p6 = por %p44_p4, %p43_p3 }
   0xc   : > { %p193_p7 = scmp.eq.s32.totalorder %s1177_s28, 1  ;;  %p199_p8 = scmp.eq.s32.totalorder %s849_s29, 1 }
   0xd   : > { %s1438_s12 = scalar_select %p1199_p6, 1, 0 }
   0xe   : > { %p926_p10 = scmp.lt.s32.totalorder %s1104_s27, 2  ;;  %p1206_p11 = por %p193_p7, %p37_p0 }
   0xf   : > { %p1210_p12 = por %p199_p8, %p43_p3  ;;  %s237_s15 = sand.u32 1, %s1100_s26  }
  0x10   : > { %s1439_s13 = scalar_select %p1206_p11, 1, 0 }
  0x11   : > { %s1440_s14 = scalar_select %p1210_p12, 1, 0 }
  0x12   : > { %s911_s16 = sshll.u32 %s1104_s27, 9  ;;  %s852_s17 = sshll.u32 %s237_s15, 5 }
  0x13   : > { %s1219_s20 = scalar_lea.hbm %s1427_s0, %s911_s16  ;;  %s241_s21 = scalar_lea.vmem [#allocation2], %s852_s17 }
  0x14   : > { %s248_s22 = sshll.u32 %s241_s21, 4  ;;  %p1223_p13 = pnand %p926_p10, %p1195_p5  ;;  %s1227_s22 = int_to_ptr.vmem [resolvable:$true] %s248_s22 }
  0x15   : > { %s1229_s29 = scalar_lea.sflag [#allocation3], %s237_s15  ;;  %s1012_s8 = scalar_lea.hbm %s1219_s20, 512 }
  0x16   : > { %p1013_p0 = scmp.ne.s32.totalorder %s1219_s20, %s1012_s8  ;;  %p1014_p1 = pneg %p1223_p13 }
  0x17   : > { %s1017_s17 = scalar_lea.hbm %s1427_s0, 1024  ;;  %p1018_p4 = scmp.lt.s32.totalorder %s1219_s20, %s1427_s0 }
  0x18   : > { %p1015_p2 = pnand %p1014_p1, %p1013_p0  ;;  %p1019_p5 = scmp.lt.s32.totalorder %s1017_s17, %s1012_s8 }
  0x1a   : > { %p1016_p3 = pneg %p1015_p2  ;;  %p1020_p7 = por %p1019_p5, %p1018_p4 }
  0x1c   : > { %p1021_p8 = pnand %p1020_p7, %p1016_p3 }
  0x1e   : > { %1024 = shalt.err (!%p1021_p8)
}
  0x1f   : > { %s1025_s15 = scalar_lea.vmem %s1227_s22, 512  ;;  %s1106_s19 = smov [#allocation2]  }
  0x20   : > { %p1026_p10 = scmp.ne.s32.totalorder %s1227_s22, %s1025_s15  ;;  %s1030_s21 = sshll.u32 %s1106_s19, 4  ;;  %s1031_s21 = int_to_ptr.vmem [resolvable:$false] %s1030_s21 }
  0x21   : > { %s1032_s9 = scalar_lea.vmem %s1031_s21, 1024  ;;  %p1033_p2 = scmp.lt.s32.totalorder %s1227_s22, %s1031_s21 }
  0x22   : > { %p1028_p9 = pnand %p1026_p10, %p1014_p1  ;;  %p1034_p12 = scmp.lt.s32.totalorder %s1032_s9, %s1025_s15 }
  0x24   : > { %p1029_p0 = pneg %p1028_p9  ;;  %p1035_p11 = por %p1034_p12, %p1033_p2 }
  0x26   : > { %p1036_p6 = pnand %p1035_p11, %p1029_p0 }
  0x28   : > { %1039 = shalt.err (!%p1036_p6)
}
  0x29   : > { %s1107_s8 = smov 128   ;;  %s1108_s16 = smov 8  }
  0x2a   : > { %921 = dma.hbm_to_vmem [thread:$0]  (!%p1223_p13), %s1219_s20, 512, %s1227_s22, %s1229_s29, %s1107_s8, %s1107_s8, %s1108_s16  }
  0x2b   : > { %p855_p9 = scmp.ge.s32.totalorder %s1104_s27, 1  ;;  %p256_p1 = scmp.lt.s32.totalorder %s1104_s27, 3 }
  0x2d   : > { %p257_p3 = pnand %p855_p9, %p256_p1 }
  0x2e   : > { %s1253_s17 = sand.u32 (!%p257_p3), 1, %s1096_s25   ;;  %p1442_p6 = scmp.ne.s32.totalorder (!%p257_p3), %s1438_s12, 0 }
  0x2f   : > { %260 = sbr.rel (%p257_p3) target bundleno = 744 (0x2e8), region = 48  ;;  %s856_s11 = sshll.u32 (!%p257_p3), %s1253_s17, 5 }
  0x30   : > { %s263_s18 = scalar_lea.sflag (!%p257_p3), [#allocation3], %s1253_s17  ;;  %s266_s15 = scalar_lea.vmem (!%p257_p3), [#allocation2], %s856_s11 }
  0x34   : > { %1083 = dma.done.wait (%p1442_p6), %s263_s18, 512  }
  0x35   : > { %1085 = vsyncadd (%p1442_p6), %s263_s18, 4294966784  ;;  %v1261_v0 = vld [vmem:[%s266_s15] sm:$0xff]  ;;  %v1263_v1 = vld [vmem:[%s266_s15 + $0x8] sm:$0xff]  ;;  %v1109_v10 = vmov 0   ;;  %s1110_s12 = smov 127   ;;  %s1111_s20 = smov 1   ;;  %v300_v14 = vlaneseq }
  0x36   : > { %v1265_v2 = vld [vmem:[%s266_s15 + $0x18] sm:$0xff]  ;;  %v315_v3 = vmax.f32 %v1261_v0, 0.0  ;;  %v316_v4 = vmax.f32 %v1263_v1, 0.0  ;;  %v1270_v6 = vld [vmem:[%s266_s15 + $0x10] sm:$0xff]  ;;  %411 = vmatprep.mubr.bf16.mxu0 %v1109_v10  ;;  %452 = vmatprep.mubr.bf16.mxu1 %v1109_v10  ;;  %v319_v13 = vld [vmem:[%s1429_s2] sm:$0xff]  ;;  %vm366_vm2 = vcmask 1043456  }
  0x37   : > { %v318_v5 = vmax.f32 %v1265_v2, 0.0  ;;  %v317_v7 = vmax.f32 %v1270_v6, 0.0  ;;  %988 = vset.pattern.permute.xlu0 %v1109_v10  ;;  %1009 = vset.pattern.permute.xlu1 %v1109_v10  ;;  %v1284_v15 = vand.u32 127, %v300_v14  ;;  %vm1112_vm3 = vmmov 1   ;;  %v356_v42 = vld [vmem:[%s1428_s1] sm:$0xf] }
  0x38   : > { %v968_v8 = vpack.i.bf16 %v316_v4, %v315_v3  ;;  %vm362_vm5 = vcmask 195584   ;;  %vm640_vm6 = vcmask 64512   ;;  %s857_s19 = sshll.u32 %s1253_s17, 6  ;;  %s913_s8 = sshll.u32 %s1177_s28, 10 }
  0x39   : > { %v978_v9 = vpack.i.bf16 %v318_v5, %v316_v4  ;;  %v973_v11 = vpack.i.bf16 %v318_v5, %v317_v7  ;;  %v983_v12 = vpack.i.bf16 %v317_v7, %v315_v3  ;;  %vm306_vm0 = vcmp.lt.s32.totalorder %v1284_v15, 127  ;;  %s296_s21 = scalar_lea.vmem [#allocation5], %s857_s19  ;;  %s1384_s18 = scalar_lea.hbm %s1434_s7, %s913_s8 }
  0x3a   : > { %969 = vrot.lane.b32.xlu0 %v968_v8, %s1110_s12  ;;  %vm302_vm1 = vcmp.ge.s32.totalorder %v1284_v15, 1  ;;  %v624_v8 = vld [vmem:[%s1433_s6 + $0x8] sm:$0xff]  ;;  %v617_v15 = vpack.c.bf16 %v1261_v0, %v1261_v0  ;;  %s776_s9 = sshll.u32 %s296_s21, 4  ;;  %s762_s28 = scalar_lea.sflag [#allocation4], %s1253_s17  ;;  %s1379_s9 = int_to_ptr.vmem [resolvable:$true] %s776_s9 }
  0x3b   : > { %979 = vrot.lane.b32.xlu1 %v978_v9, %s1111_s20  ;;  %vm1292_vm4 = vmpackc.low %vm1112_vm3, %vm302_vm1  ;;  %s1040_s15 = scalar_lea.vmem %s1379_s9, 1024  ;;  %p1445_p12 = scmp.ne.s32.totalorder %s1439_s13, 0 }
  0x3c   : > { %v645_v0 = vsel %vm366_vm2, %v617_v15, 0  ;;  %p1041_p11 = scmp.ne.s32.totalorder %s1379_s9, %s1040_s15 }
  0x3e   : > { %974 = vrot.lane.b32.xlu0 %v973_v11, %s1110_s12  ;;  %p1042_p13 = pnand %p1041_p11, %p1445_p12 }
  0x3f   : > { %984 = vrot.lane.b32.xlu1 %v983_v12, %s1111_s20 }
  0x40   : > { %p1043_p4 = pneg %p1042_p13 }
  0x42   : > { %359 = vperm.xlu0 %988, %v319_v13  }
  0xac   : > { %v970_v16 = vpop.permute.xlu0 %969 }
  0xad   : > { %v980_v17 = vpop.permute.xlu1 %979  ;;  %v972_v18 = vunpack.i.h.bf16 %v970_v16  ;;  %v971_v19 = vunpack.i.l.bf16 %v970_v16 }
  0xae   : > { %v981_v20 = vunpack.i.l.bf16 %v980_v17  ;;  %v982_v32 = vunpack.i.h.bf16 %v980_v17 }
  0xaf   : > { %v335_v21 = vsel %vm306_vm0, %v972_v18, 0.0  ;;  %v329_v22 = vsel %vm306_vm0, %v971_v19, 0.0 }
  0xb0   : > { %v863_v23 = vpack.c.bf16 %v316_v4, %v981_v20  ;;  %v975_v24 = vpop.permute.xlu0 %974  ;;  %v351_v26 = vpack.c.bf16 %v335_v21, %v335_v21  ;;  %v349_v27 = vpack.c.bf16 %v329_v22, %v329_v22  ;;  %v871_v40 = vpack.c.bf16 %v318_v5, %v982_v32  ;;  %v623_v5 = vld [vmem:[%s1433_s6] sm:$0xff] }
  0xb1   : > { %v985_v25 = vpop.permute.xlu1 %984  ;;  %v977_v28 = vunpack.i.h.bf16 %v975_v24  ;;  %v976_v29 = vunpack.i.l.bf16 %v975_v24 }
  0xb2   : > { %v986_v30 = vunpack.i.l.bf16 %v985_v25  ;;  %861 = vmatprep.subr.msk.bf16.mxu0 %vm366_vm2, %v351_v26  ;;  %v368_v33 = vsel %vm366_vm2, %v349_v27, 0  ;;  %v987_v39 = vunpack.i.h.bf16 %v985_v25 }
  0xb3   : > { %392 = vmatpush1.bf16.msra.mxu0 %v368_v33  ;;  %v347_v35 = vsel %vm306_vm0, %v977_v28, 0.0  ;;  %v341_v36 = vsel %vm306_vm0, %v976_v29, 0.0 }
  0xb4   : > { %v866_v34 = vpack.c.bf16 %v315_v3, %v986_v30  ;;  %864 = vmatprep.subr.msk.bf16.mxu0 %vm1292_vm4, %v863_v23  ;;  %v355_v37 = vpack.c.bf16 %v347_v35, %v347_v35  ;;  %v353_v38 = vpack.c.bf16 %v341_v36, %v341_v36  ;;  %v874_v43 = vpack.c.bf16 %v317_v7, %v987_v39  ;;  %v465_v3 = vld [vmem:[%s1431_s4] sm:$0xff]  ;;  %v466_v7 = vld [vmem:[%s1431_s4 + $0x8] sm:$0xff] }
  0xb5   : > { %v618_v36 = vpack.c.bf16 %v1263_v1, %v1263_v1  ;;  %v620_v39 = vpack.c.bf16 %v1265_v2, %v1265_v2  ;;  %v1011_v2 = vld [vmem:[%s1432_s5] sm:$0xff]  }
  0xb6   : > { %869 = vmatprep.subr.msk.bf16.mxu1 %vm366_vm2, %v355_v37  ;;  %v374_v41 = vsel %vm366_vm2, %v353_v38, 0  ;;  %v1010_v38 = vld [vmem:[%s1430_s3] sm:$0xff]  }
  0xb7   : > { %867 = vmatpush1.bf16.msk.msra.mxu0 %vm1292_vm4, %v866_v34  ;;  %433 = vmatpush1.bf16.msra.mxu1 %v374_v41 }
  0xb8   : > { %872 = vmatprep.subr.msk.bf16.mxu1 %vm1292_vm4, %v871_v40  ;;  %v619_v40 = vpack.c.bf16 %v1270_v6, %v1270_v6 }
  0xba   : > { %868 = vmatmul.mubr.msk.bf16.vlgmr.msra.gmra.mxu0 %vm362_vm5, %v356_v42  ;;  %v651_v1 = vsel %vm366_vm2, %v619_v40, 0 }
  0xbb   : > { %875 = vmatpush1.bf16.msk.msra.mxu1 %vm1292_vm4, %v874_v43  ;;  %563 = vmatprep.mubr.bf16.mxu0 %v1109_v10 }
  0xbd   : > { %v360_v44 = vpop.permute.xlu0 %359 }
  0xbe   : > { %876 = vmatmul.mubr.msk.bf16.vlgmr.msra.gmra.mxu1 %vm362_vm5, %v356_v42 }
  0xbf   : > { %606 = vmatprep.mubr.bf16.mxu1 %v1109_v10 }
 0x17a   : > { %v413_v45 = vpop.f32.mrf.mxu0 }
 0x17b   : > { %v414_v46 = vadd.f32 %v413_v45, %v360_v44 }
 0x17c   : > { %v415_v47 = vpop.f32.mrf.mxu0 }
 0x17d   : > { %v416_v48 = vadd.f32 %v415_v47, %v360_v44  ;;  %v461_v51 = vmax.f32 %v414_v46, 0.0 }
 0x17e   : > { %v417_v49 = vpop.f32.mrf.mxu0  ;;  %v454_v50 = vpop.f32.mrf.mxu1 }
 0x17f   : > { %v462_v52 = vmax.f32 %v416_v48, 0.0  ;;  %v455_v53 = vadd.f32 %v454_v50, %v360_v44 }
 0x180   : > { %v418_v54 = vpop.f32.mrf.mxu0  ;;  %v456_v55 = vpop.f32.mrf.mxu1 }
 0x181   : > { %v457_v56 = vadd.f32 %v456_v55, %v360_v44  ;;  %v989_v57 = vpack.i.bf16 %v462_v52, %v461_v51  ;;  %v463_v59 = vmax.f32 %v455_v53, 0.0 }
 0x182   : > { %v458_v58 = vpop.f32.mrf.mxu1 }
 0x183   : > { %v464_v60 = vmax.f32 %v457_v56, 0.0  ;;  %990 = vrot.lane.b32.xlu1 %v989_v57, %s1110_s12  ;;  %v1004_v4 = vpack.i.bf16 %v463_v59, %v461_v51 }
 0x184   : > { %v459_v61 = vpop.f32.mrf.mxu1 }
 0x185   : > { %v999_v62 = vpack.i.bf16 %v464_v60, %v462_v52  ;;  %v994_v63 = vpack.i.bf16 %v464_v60, %v463_v59 }
 0x187   : > { %1000 = vrot.lane.b32.xlu0 %v999_v62, %s1111_s20  ;;  %995 = vrot.lane.b32.xlu1 %v994_v63, %s1110_s12  ;;  %s1113_s12 = smov [#allocation5]  }
 0x18b   : > { %503 = vperm.xlu0 %988, %v465_v3   ;;  %1005 = vrot.lane.b32.xlu1 %v1004_v4, %s1111_s20  ;;  %s1044_s20 = sshll.u32 %s1113_s12, 4  ;;  %s1045_s20 = int_to_ptr.vmem [resolvable:$false] %s1044_s20 }
 0x18c   : > { %s1046_s22 = scalar_lea.vmem %s1045_s20, 2048  ;;  %p1047_p5 = scmp.lt.s32.totalorder %s1379_s9, %s1045_s20 }
 0x18d   : > { %p1048_p7 = scmp.lt.s32.totalorder %s1046_s22, %s1040_s15 }
 0x18f   : > { %627 = vperm.xlu0 %988, %v623_v5   ;;  %508 = vperm.xlu1 %1009, %v466_v7   ;;  %p1049_p8 = por %p1048_p7, %p1047_p5 }
 0x191   : > { %p1050_p10 = pnand %p1049_p8, %p1043_p4 }
 0x193   : > { %632 = vperm.xlu1 %1009, %v624_v8  }
 0x1f5   : > { %v991_v9 = vpop.permute.xlu1 %990 }
 0x1f6   : > { %v993_v11 = vunpack.i.h.bf16 %v991_v9  ;;  %v992_v12 = vunpack.i.l.bf16 %v991_v9 }
 0x1f8   : > { %v478_v13 = vsel %vm306_vm0, %v993_v11, 0.0  ;;  %v472_v14 = vsel %vm306_vm0, %v992_v12, 0.0 }
 0x1f9   : > { %v494_v16 = vpack.c.bf16 %v478_v13, %v478_v13  ;;  %v492_v17 = vpack.c.bf16 %v472_v14, %v472_v14  ;;  %v1001_v18 = vpop.permute.xlu0 %1000  ;;  %v996_v19 = vpop.permute.xlu1 %995 }
 0x1fa   : > { %v1002_v20 = vunpack.i.l.bf16 %v1001_v18  ;;  %v998_v21 = vunpack.i.h.bf16 %v996_v19  ;;  %v997_v22 = vunpack.i.l.bf16 %v996_v19  ;;  %v1003_v23 = vunpack.i.h.bf16 %v1001_v18 }
 0x1fb   : > { %878 = vmatprep.subr.msk.bf16.mxu0 %vm366_vm2, %v494_v16  ;;  %v520_v24 = vsel %vm366_vm2, %v492_v17, 0 }
 0x1fc   : > { %v880_v25 = vpack.c.bf16 %v462_v52, %v1002_v20  ;;  %v490_v26 = vsel %vm306_vm0, %v998_v21, 0.0  ;;  %v484_v27 = vsel %vm306_vm0, %v997_v22, 0.0  ;;  %544 = vmatpush1.bf16.msra.mxu0 %v520_v24  ;;  %v888_v34 = vpack.c.bf16 %v464_v60, %v1003_v23 }
 0x1fd   : > { %v498_v28 = vpack.c.bf16 %v490_v26, %v490_v26  ;;  %v496_v29 = vpack.c.bf16 %v484_v27, %v484_v27  ;;  %v1006_v30 = vpop.permute.xlu1 %1005 }
 0x1fe   : > { %v1008_v32 = vunpack.i.h.bf16 %v1006_v30  ;;  %v1007_v33 = vunpack.i.l.bf16 %v1006_v30  ;;  %881 = vmatprep.subr.msk.bf16.mxu0 %vm1292_vm4, %v880_v25 }
 0x1ff   : > { %886 = vmatprep.subr.msk.bf16.mxu1 %vm366_vm2, %v498_v28  ;;  %v526_v35 = vsel %vm366_vm2, %v496_v29, 0 }
 0x200   : > { %v883_v37 = vpack.c.bf16 %v461_v51, %v1007_v33  ;;  %587 = vmatpush1.bf16.msra.mxu1 %v526_v35  ;;  %v891_v41 = vpack.c.bf16 %v463_v59, %v1008_v32 }
 0x201   : > { %889 = vmatprep.subr.msk.bf16.mxu1 %vm1292_vm4, %v888_v34 }
 0x202   : > { %884 = vmatpush1.bf16.msk.msra.mxu0 %vm1292_vm4, %v883_v37 }
 0x203   : > { %895 = vmatprep.subr.msk.bf16.mxu0 %vm366_vm2, %v618_v36 }
 0x204   : > { %892 = vmatpush1.bf16.msk.msra.mxu1 %vm1292_vm4, %v891_v41 }
 0x205   : > { %885 = vmatmul.mubr.msk.bf16.vlgmr.msra.gmra.mxu0 %vm362_vm5, %v1010_v38  ;;  %897 = vmatprep.subr.msk.bf16.mxu1 %vm366_vm2, %v620_v39 }
 0x206   : > { %671 = vmatpush1.bf16.msra.mxu0 %v645_v0  ;;  %688 = vmatprep.mubr.bf16.mxu0 %v1109_v10  ;;  %v504_v31 = vpop.permute.xlu0 %503 }
 0x207   : > { %893 = vmatmul.mubr.msk.bf16.vlgmr.msra.gmra.mxu1 %vm362_vm5, %v1010_v38 }
 0x208   : > { %714 = vmatpush1.bf16.msra.mxu1 %v651_v1  ;;  %731 = vmatprep.mubr.bf16.mxu1 %v1109_v10 }
 0x20a   : > { %v509_v46 = vpop.permute.xlu1 %508  ;;  %v628_v49 = vpop.permute.xlu0 %627 }
 0x20d   : > { %896 = vmatmul.mubr.msk.bf16.vlgmr.msra.gmra.mxu0 %vm640_vm6, %v1011_v2 }
 0x20e   : > { %v633_v53 = vpop.permute.xlu1 %632 }
 0x20f   : > { %898 = vmatmul.mubr.msk.bf16.vlgmr.msra.gmra.mxu1 %vm640_vm6, %v1011_v2 }
 0x2c5   : > { %v565_v6 = vpop.f32.mrf.mxu0 }
 0x2c6   : > { %v566_v51 = vadd.f32 %v565_v6, %v504_v31 }
 0x2c7   : > { %v567_v42 = vpop.f32.mrf.mxu0  ;;  %v608_v43 = vpop.f32.mrf.mxu1 }
 0x2c8   : > { %v568_v54 = vadd.f32 %v567_v42, %v504_v31  ;;  %v609_v57 = vadd.f32 %v608_v43, %v504_v31 }
 0x2c9   : > { %v569_v44 = vpop.f32.mrf.mxu0  ;;  %v610_v45 = vpop.f32.mrf.mxu1 }
 0x2ca   : > { %v570_v61 = vadd.f32 %v569_v44, %v509_v46  ;;  %v611_v62 = vadd.f32 %v610_v45, %v504_v31 }
 0x2cb   : > { %v571_v47 = vpop.f32.mrf.mxu0  ;;  %v612_v48 = vpop.f32.mrf.mxu1 }
 0x2cc   : > { %v572_v9 = vadd.f32 %v571_v47, %v509_v46  ;;  %v613_v11 = vadd.f32 %v612_v48, %v509_v46 }
 0x2cd   : > { %v614_v50 = vpop.f32.mrf.mxu1  ;;  %v690_v10 = vpop.f32.mrf.mxu0 }
 0x2ce   : > { %v691_v52 = vadd.f32 %v690_v10, %v628_v49  ;;  %v615_v20 = vadd.f32 %v614_v50, %v509_v46 }
 0x2cf   : > { %v692_v55 = vpop.f32.mrf.mxu0  ;;  %v733_v56 = vpop.f32.mrf.mxu1 }
 0x2d0   : > { %v742_v58 = vadd.f32 %v691_v52, %v566_v51  ;;  %v693_v59 = vadd.f32 %v692_v55, %v628_v49  ;;  %v734_v60 = vadd.f32 %v733_v56, %v628_v49 }
 0x2d1   : > { %v694_v63 = vpop.f32.mrf.mxu0  ;;  %v735_v3 = vpop.f32.mrf.mxu1 }
 0x2d2   : > { %750 = vst [vmem:[%s296_s21] sm:$0xff] %v742_v58  ;;  %v743_v4 = vadd.f32 %v693_v59, %v568_v54  ;;  %v744_v5 = vadd.f32 %v734_v60, %v609_v57  ;;  %v695_v7 = vadd.f32 %v694_v63, %v633_v53  ;;  %v736_v8 = vadd.f32 %v735_v3, %v628_v49 }
 0x2d3   : > { %v696_v12 = vpop.f32.mrf.mxu0  ;;  %v737_v13 = vpop.f32.mrf.mxu1 }
 0x2d4   : > { %899 = vst [vmem:[%s296_s21 + $0x10] sm:$0xff] %v743_v4  ;;  %901 = vst [vmem:[%s296_s21 + $0x20] sm:$0xff] %v744_v5  ;;  %v746_v14 = vadd.f32 %v695_v7, %v570_v61  ;;  %v745_v16 = vadd.f32 %v736_v8, %v611_v62  ;;  %v697_v17 = vadd.f32 %v696_v12, %v633_v53 }
 0x2d5   : > { %v738_v18 = vadd.f32 %v737_v13, %v633_v53  ;;  %v739_v19 = vpop.f32.mrf.mxu1 }
 0x2d6   : > { %751 = vst [vmem:[%s296_s21 + $0x8] sm:$0xff] %v746_v14  ;;  %903 = vst [vmem:[%s296_s21 + $0x30] sm:$0xff] %v745_v16  ;;  %v747_v21 = vadd.f32 %v697_v17, %v572_v9  ;;  %v740_v23 = vadd.f32 %v739_v19, %v633_v53 }
 0x2d7   : > { %v748_v22 = vadd.f32 %v738_v18, %v613_v11 }
 0x2d8   : > { %900 = vst [vmem:[%s296_s21 + $0x18] sm:$0xff] %v747_v21  ;;  %v749_v24 = vadd.f32 %v740_v23, %v615_v20 }
 0x2d9   : > { %902 = vst [vmem:[%s296_s21 + $0x28] sm:$0xff] %v748_v22 }
 0x2da   : > { %904 = vst [vmem:[%s296_s21 + $0x38] sm:$0xff] %v749_v24 }
 0x2db   : > { %1053 = shalt.err (!%p1050_p10)
}
 0x2dc   : > { %s1054_s23 = scalar_lea.hbm %s1384_s18, 1024  ;;  %s1058_s21 = scalar_lea.hbm %s1434_s7, 2048 }
 0x2dd   : > { %p1055_p0 = scmp.ne.s32.totalorder %s1384_s18, %s1054_s23  ;;  %p1059_p1 = scmp.lt.s32.totalorder %s1384_s18, %s1434_s7 }
 0x2de   : > { %p1060_p3 = scmp.lt.s32.totalorder %s1058_s21, %s1054_s23 }
 0x2df   : > { %p1056_p2 = pnand %p1055_p0, %p1445_p12 }
 0x2e0   : > { %p1061_p6 = por %p1060_p3, %p1059_p1 }
 0x2e1   : > { %p1057_p9 = pneg %p1056_p2 }
 0x2e3   : > { %p1062_p11 = pnand %p1061_p6, %p1057_p9 }
 0x2e5   : > { %1065 = shalt.err (!%p1062_p11)
}
 0x2e6   : > { %s1114_s11 = smov 128   ;;  %s1115_s15 = smov 8  }
 0x2e7   : > { %916 = dma.vmem_to_hbm [thread:$0]  (%p1445_p12), %s1379_s9, 1024, %s1384_s18, %s762_s28, %s1114_s11, %s1114_s11, %s1115_s15  }
 0x2e8 PF: > { %s791_s12 = sand.u32 1, %s1092_s24   ;;  %p1446_p13 = scmp.ne.s32.totalorder %s1440_s14, 0 }
 0x2e9   : > { %p1447_p4 = scmp.ge.s32.totalorder %s1104_s27, 2  ;;  %s792_s20 = scalar_lea.sflag [#allocation4], %s791_s12 }
 0x2eb   : > { %p923_p5 = pnand %p1447_p4, %p1446_p13 }
 0x2ed   : > { %p924_p7 = pneg %p923_p5 }
 0x2ef   : > { %1087 = dma.done.wait (%p924_p7), %s792_s20, 1024  }
 0x2f0   : > { %1089 = vsyncadd (%p924_p7), %s792_s20, 4294966272  ;;  %p20_p8 = scmp.ge.s32.totalorder %s1181_s30, 4   ;;  %s1448_s24 = smov %s1096_s25 }
 0x2f1   : > { %s1449_s25 = smov %s1100_s26  ;;  %s1450_s26 = smov %s1193_s10 }
 0x2f2   : > { %s1451_s27 = smov %s1181_s30  ;;  %22 = sbr.rel (!%p20_p8) target bundleno = 5 (0x5), region = 99 }
 0x2f7   :  { %797 = vsyncpa [#allocation3], 1 }
 0x2f8   :  { %799 = vsyncpa [#allocation3 + $0x1], 1 }
 0x2f9   :  { %800 = vsyncpa [#allocation4], 1 }
 0x2fa   :  { %802 = vsyncpa [#allocation4 + $0x1], 1 }

// kernel: tpu_custom_call.1
= control target key start
LH: loop header
LB: loop body
LE: loop exit
PB: predicated region body
PF: predicated region fallthrough
CT: control target
= control target key end

     0   :  { %12 = vsyncpa [#allocation3], 0  ;;  %s1427_s0 = inlined_call_operand.hbm [shape: f32[8,8,128], index: 0, kind: input, shape index: {}]   ;;  %s1428_s1 = inlined_call_operand.vmem [shape: bf16[8,24], index: 1, kind: input, shape index: {}]   ;;  %s1429_s2 = inlined_call_operand.vmem [shape: f32[8,1], index: 2, kind: input, shape index: {}]   ;;  %s1430_s3 = inlined_call_operand.vmem [shape: bf16[16,24], index: 3, kind: input, shape index: {}]   ;;  %s1431_s4 = inlined_call_operand.vmem [shape: f32[16,1], index: 4, kind: input, shape index: {}]   ;;  %s1432_s5 = inlined_call_operand.vmem [shape: bf16[16,8], index: 5, kind: input, shape index: {}]   ;;  %s1433_s6 = inlined_call_operand.vmem [shape: f32[16,1], index: 6, kind: input, shape index: {}]   ;;  %s1434_s7 = inlined_call_operand.hbm [shape: f32[8,16,128], index: 7, kind: output, shape index: {}]  }
   0x1   :  { %14 = vsyncpa [#allocation3 + $0x1], 0 }
   0x2   :  { %15 = vsyncpa [#allocation4], 0 }
   0x3   :  { %17 = vsyncpa [#allocation4 + $0x1], 0  ;;  %s1156_s24 = smov 0   ;;  %s1158_s25 = smov 0  }
   0x4   :  { %s1160_s26 = smov 0   ;;  %s1162_s27 = smov 0  }
   0x5 LB: > { %s1177_s28 = sadd.s32 4294967295, %s1104_s27   ;;  %s849_s29 = sadd.s32 4294967294, %s1104_s27   ;;  %s1104_s27 = sphi %s1162_s27, %s1451_s27   ;;  %s1100_s26 = sphi %s1160_s26, %s1450_s26   ;;  %s1096_s25 = sphi %s1158_s25, %s1449_s25   ;;  %s1092_s24 = sphi %s1156_s24, %s1448_s24  }
   0x6   : > { %s1181_s30 = sadd.s32 1, %s1104_s27   ;;  %s30_s8 = sadd.s32 1, %s1100_s26 }
   0x7   : > { %s27_s9 = ssub.s32 %s1104_s27, %s1181_s30  ;;  %p37_p0 = scmp.ne.s32.totalorder %s1100_s26, %s1096_s25 }
   0x8   : > { %p28_p1 = scmp.eq.s32.totalorder %s27_s9, 0  ;;  %p38_p2 = scmp.eq.s32.totalorder %s1104_s27, 0 }
   0x9   : > { %p43_p3 = scmp.ne.s32.totalorder %s1096_s25, %s1092_s24  ;;  %p44_p4 = scmp.eq.s32.totalorder %s1177_s28, 0 }
   0xa   : > { %s1193_s10 = scalar_select %p28_p1, %s1100_s26, %s30_s8  }
   0xb   : > { %p1195_p5 = por %p38_p2, %p37_p0  ;;  %p1199_p6 = por %p44_p4, %p43_p3 }
   0xc   : > { %p193_p7 = scmp.eq.s32.totalorder %s1177_s28, 1  ;;  %p199_p8 = scmp.eq.s32.totalorder %s849_s29, 1 }
   0xd   : > { %s1438_s12 = scalar_select %p1199_p6, 1, 0 }
   0xe   : > { %p926_p10 = scmp.lt.s32.totalorder %s1104_s27, 2  ;;  %p1206_p11 = por %p193_p7, %p37_p0 }
   0xf   : > { %p1210_p12 = por %p199_p8, %p43_p3  ;;  %s237_s15 = sand.u32 1, %s1100_s26  }
  0x10   : > { %s1439_s13 = scalar_select %p1206_p11, 1, 0 }
  0x11   : > { %s1440_s14 = scalar_select %p1210_p12, 1, 0 }
  0x12   : > { %s911_s16 = sshll.u32 %s1104_s27, 9  ;;  %s852_s17 = sshll.u32 %s237_s15, 5 }
  0x13   : > { %s1219_s20 = scalar_lea.hbm %s1427_s0, %s911_s16  ;;  %s241_s21 = scalar_lea.vmem [#allocation2], %s852_s17 }
  0x14   : > { %s248_s22 = sshll.u32 %s241_s21, 4  ;;  %p1223_p13 = pnand %p926_p10, %p1195_p5  ;;  %s1227_s22 = int_to_ptr.vmem [resolvable:$true] %s248_s22 }
  0x15   : > { %s1229_s29 = scalar_lea.sflag [#allocation3], %s237_s15  ;;  %s1012_s8 = scalar_lea.hbm %s1219_s20, 512 }
  0x16   : > { %p1013_p0 = scmp.ne.s32.totalorder %s1219_s20, %s1012_s8  ;;  %p1014_p1 = pneg %p1223_p13 }
  0x17   : > { %s1017_s17 = scalar_lea.hbm %s1427_s0, 1024  ;;  %p1018_p4 = scmp.lt.s32.totalorder %s1219_s20, %s1427_s0 }
  0x18   : > { %p1015_p2 = pnand %p1014_p1, %p1013_p0  ;;  %p1019_p5 = scmp.lt.s32.totalorder %s1017_s17, %s1012_s8 }
  0x1a   : > { %p1016_p3 = pneg %p1015_p2  ;;  %p1020_p7 = por %p1019_p5, %p1018_p4 }
  0x1c   : > { %p1021_p8 = pnand %p1020_p7, %p1016_p3 }
  0x1e   : > { %1024 = shalt.err (!%p1021_p8)
}
  0x1f   : > { %s1025_s15 = scalar_lea.vmem %s1227_s22, 512  ;;  %s1106_s19 = smov [#allocation2]  }
  0x20   : > { %p1026_p10 = scmp.ne.s32.totalorder %s1227_s22, %s1025_s15  ;;  %s1030_s21 = sshll.u32 %s1106_s19, 4  ;;  %s1031_s21 = int_to_ptr.vmem [resolvable:$false] %s1030_s21 }
  0x21   : > { %s1032_s9 = scalar_lea.vmem %s1031_s21, 1024  ;;  %p1033_p2 = scmp.lt.s32.totalorder %s1227_s22, %s1031_s21 }
  0x22   : > { %p1028_p9 = pnand %p1026_p10, %p1014_p1  ;;  %p1034_p12 = scmp.lt.s32.totalorder %s1032_s9, %s1025_s15 }
  0x24   : > { %p1029_p0 = pneg %p1028_p9  ;;  %p1035_p11 = por %p1034_p12, %p1033_p2 }
  0x26   : > { %p1036_p6 = pnand %p1035_p11, %p1029_p0 }
  0x28   : > { %1039 = shalt.err (!%p1036_p6)
}
  0x29   : > { %s1107_s8 = smov 128   ;;  %s1108_s16 = smov 8  }
  0x2a   : > { %921 = dma.hbm_to_vmem [thread:$0]  (!%p1223_p13), %s1219_s20, 512, %s1227_s22, %s1229_s29, %s1107_s8, %s1107_s8, %s1108_s16  }
  0x2b   : > { %p855_p9 = scmp.ge.s32.totalorder %s1104_s27, 1  ;;  %p256_p1 = scmp.lt.s32.totalorder %s1104_s27, 3 }
  0x2d   : > { %p257_p3 = pnand %p855_p9, %p256_p1 }
  0x2e   : > { %s1253_s17 = sand.u32 (!%p257_p3), 1, %s1096_s25   ;;  %p1442_p6 = scmp.ne.s32.totalorder (!%p257_p3), %s1438_s12, 0 }
  0x2f   : > { %260 = sbr.rel (%p257_p3) target bundleno = 744 (0x2e8), region = 48  ;;  %s856_s11 = sshll.u32 (!%p257_p3), %s1253_s17, 5 }
  0x30   : > { %s263_s18 = scalar_lea.sflag (!%p257_p3), [#allocation3], %s1253_s17  ;;  %s266_s15 = scalar_lea.vmem (!%p257_p3), [#allocation2], %s856_s11 }
  0x34   : > { %1083 = dma.done.wait (%p1442_p6), %s263_s18, 512  }
  0x35   : > { %1085 = vsyncadd (%p1442_p6), %s263_s18, 4294966784  ;;  %v1261_v0 = vld [vmem:[%s266_s15] sm:$0xff]  ;;  %v1263_v1 = vld [vmem:[%s266_s15 + $0x8] sm:$0xff]  ;;  %v1109_v10 = vmov 0   ;;  %s1110_s12 = smov 127   ;;  %s1111_s20 = smov 1   ;;  %v300_v14 = vlaneseq }
  0x36   : > { %v1265_v2 = vld [vmem:[%s266_s15 + $0x18] sm:$0xff]  ;;  %v315_v3 = vmax.f32 %v1261_v0, 0.0  ;;  %v316_v4 = vmax.f32 %v1263_v1, 0.0  ;;  %v1270_v6 = vld [vmem:[%s266_s15 + $0x10] sm:$0xff]  ;;  %411 = vmatprep.mubr.bf16.mxu0 %v1109_v10  ;;  %452 = vmatprep.mubr.bf16.mxu1 %v1109_v10  ;;  %v319_v13 = vld [vmem:[%s1429_s2] sm:$0xff]  ;;  %vm366_vm2 = vcmask 1043456  }
  0x37   : > { %v318_v5 = vmax.f32 %v1265_v2, 0.0  ;;  %v317_v7 = vmax.f32 %v1270_v6, 0.0  ;;  %988 = vset.pattern.permute.xlu0 %v1109_v10  ;;  %1009 = vset.pattern.permute.xlu1 %v1109_v10  ;;  %v1284_v15 = vand.u32 127, %v300_v14  ;;  %vm1112_vm3 = vmmov 1   ;;  %v356_v42 = vld [vmem:[%s1428_s1] sm:$0xf] }
  0x38   : > { %v968_v8 = vpack.i.bf16 %v316_v4, %v315_v3  ;;  %vm362_vm5 = vcmask 195584   ;;  %vm640_vm6 = vcmask 64512   ;;  %s857_s19 = sshll.u32 %s1253_s17, 6  ;;  %s913_s8 = sshll.u32 %s1177_s28, 10 }
  0x39   : > { %v978_v9 = vpack.i.bf16 %v318_v5, %v316_v4  ;;  %v973_v11 = vpack.i.bf16 %v318_v5, %v317_v7  ;;  %v983_v12 = vpack.i.bf16 %v317_v7, %v315_v3  ;;  %vm306_vm0 = vcmp.lt.s32.totalorder %v1284_v15, 127  ;;  %s296_s21 = scalar_lea.vmem [#allocation5], %s857_s19  ;;  %s1384_s18 = scalar_lea.hbm %s1434_s7, %s913_s8 }
  0x3a   : > { %969 = vrot.lane.b32.xlu0 %v968_v8, %s1110_s12  ;;  %vm302_vm1 = vcmp.ge.s32.totalorder %v1284_v15, 1  ;;  %v624_v8 = vld [vmem:[%s1433_s6 + $0x8] sm:$0xff]  ;;  %v617_v15 = vpack.c.bf16 %v1261_v0, %v1261_v0  ;;  %s776_s9 = sshll.u32 %s296_s21, 4  ;;  %s762_s28 = scalar_lea.sflag [#allocation4], %s1253_s17  ;;  %s1379_s9 = int_to_ptr.vmem [resolvable:$true] %s776_s9 }
  0x3b   : > { %979 = vrot.lane.b32.xlu1 %v978_v9, %s1111_s20  ;;  %vm1292_vm4 = vmpackc.low %vm1112_vm3, %vm302_vm1  ;;  %s1040_s15 = scalar_lea.vmem %s1379_s9, 1024  ;;  %p1445_p12 = scmp.ne.s32.totalorder %s1439_s13, 0 }
  0x3c   : > { %v645_v0 = vsel %vm366_vm2, %v617_v15, 0  ;;  %p1041_p11 = scmp.ne.s32.totalorder %s1379_s9, %s1040_s15 }
  0x3e   : > { %974 = vrot.lane.b32.xlu0 %v973_v11, %s1110_s12  ;;  %p1042_p13 = pnand %p1041_p11, %p1445_p12 }
  0x3f   : > { %984 = vrot.lane.b32.xlu1 %v983_v12, %s1111_s20 }
  0x40   : > { %p1043_p4 = pneg %p1042_p13 }
  0x42   : > { %359 = vperm.xlu0 %988, %v319_v13  }
  0xac   : > { %v970_v16 = vpop.permute.xlu0 %969 }
  0xad   : > { %v980_v17 = vpop.permute.xlu1 %979  ;;  %v972_v18 = vunpack.i.h.bf16 %v970_v16  ;;  %v971_v19 = vunpack.i.l.bf16 %v970_v16 }
  0xae   : > { %v981_v20 = vunpack.i.l.bf16 %v980_v17  ;;  %v982_v32 = vunpack.i.h.bf16 %v980_v17 }
  0xaf   : > { %v335_v21 = vsel %vm306_vm0, %v972_v18, 0.0  ;;  %v329_v22 = vsel %vm306_vm0, %v971_v19, 0.0 }
  0xb0   : > { %v863_v23 = vpack.c.bf16 %v316_v4, %v981_v20  ;;  %v975_v24 = vpop.permute.xlu0 %974  ;;  %v351_v26 = vpack.c.bf16 %v335_v21, %v335_v21  ;;  %v349_v27 = vpack.c.bf16 %v329_v22, %v329_v22  ;;  %v871_v40 = vpack.c.bf16 %v318_v5, %v982_v32  ;;  %v623_v5 = vld [vmem:[%s1433_s6] sm:$0xff] }
  0xb1   : > { %v985_v25 = vpop.permute.xlu1 %984  ;;  %v977_v28 = vunpack.i.h.bf16 %v975_v24  ;;  %v976_v29 = vunpack.i.l.bf16 %v975_v24 }
  0xb2   : > { %v986_v30 = vunpack.i.l.bf16 %v985_v25  ;;  %861 = vmatprep.subr.msk.bf16.mxu0 %vm366_vm2, %v351_v26  ;;  %v368_v33 = vsel %vm366_vm2, %v349_v27, 0  ;;  %v987_v39 = vunpack.i.h.bf16 %v985_v25 }
  0xb3   : > { %392 = vmatpush1.bf16.msra.mxu0 %v368_v33  ;;  %v347_v35 = vsel %vm306_vm0, %v977_v28, 0.0  ;;  %v341_v36 = vsel %vm306_vm0, %v976_v29, 0.0 }
  0xb4   : > { %v866_v34 = vpack.c.bf16 %v315_v3, %v986_v30  ;;  %864 = vmatprep.subr.msk.bf16.mxu0 %vm1292_vm4, %v863_v23  ;;  %v355_v37 = vpack.c.bf16 %v347_v35, %v347_v35  ;;  %v353_v38 = vpack.c.bf16 %v341_v36, %v341_v36  ;;  %v874_v43 = vpack.c.bf16 %v317_v7, %v987_v39  ;;  %v465_v3 = vld [vmem:[%s1431_s4] sm:$0xff]  ;;  %v466_v7 = vld [vmem:[%s1431_s4 + $0x8] sm:$0xff] }
  0xb5   : > { %v618_v36 = vpack.c.bf16 %v1263_v1, %v1263_v1  ;;  %v620_v39 = vpack.c.bf16 %v1265_v2, %v1265_v2  ;;  %v1011_v2 = vld [vmem:[%s1432_s5] sm:$0xff]  }
  0xb6   : > { %869 = vmatprep.subr.msk.bf16.mxu1 %vm366_vm2, %v355_v37  ;;  %v374_v41 = vsel %vm366_vm2, %v353_v38, 0  ;;  %v1010_v38 = vld [vmem:[%s1430_s3] sm:$0xff]  }
  0xb7   : > { %867 = vmatpush1.bf16.msk.msra.mxu0 %vm1292_vm4, %v866_v34  ;;  %433 = vmatpush1.bf16.msra.mxu1 %v374_v41 }
  0xb8   : > { %872 = vmatprep.subr.msk.bf16.mxu1 %vm1292_vm4, %v871_v40  ;;  %v619_v40 = vpack.c.bf16 %v1270_v6, %v1270_v6 }
  0xba   : > { %868 = vmatmul.mubr.msk.bf16.vlgmr.msra.gmra.mxu0 %vm362_vm5, %v356_v42  ;;  %v651_v1 = vsel %vm366_vm2, %v619_v40, 0 }
  0xbb   : > { %875 = vmatpush1.bf16.msk.msra.mxu1 %vm1292_vm4, %v874_v43  ;;  %563 = vmatprep.mubr.bf16.mxu0 %v1109_v10 }
  0xbd   : > { %v360_v44 = vpop.permute.xlu0 %359 }
  0xbe   : > { %876 = vmatmul.mubr.msk.bf16.vlgmr.msra.gmra.mxu1 %vm362_vm5, %v356_v42 }
  0xbf   : > { %606 = vmatprep.mubr.bf16.mxu1 %v1109_v10 }
 0x17a   : > { %v413_v45 = vpop.f32.mrf.mxu0 }
 0x17b   : > { %v414_v46 = vadd.f32 %v413_v45, %v360_v44 }
 0x17c   : > { %v415_v47 = vpop.f32.mrf.mxu0 }
 0x17d   : > { %v416_v48 = vadd.f32 %v415_v47, %v360_v44  ;;  %v461_v51 = vmax.f32 %v414_v46, 0.0 }
 0x17e   : > { %v417_v49 = vpop.f32.mrf.mxu0  ;;  %v454_v50 = vpop.f32.mrf.mxu1 }
 0x17f   : > { %v462_v52 = vmax.f32 %v416_v48, 0.0  ;;  %v455_v53 = vadd.f32 %v454_v50, %v360_v44 }
 0x180   : > { %v418_v54 = vpop.f32.mrf.mxu0  ;;  %v456_v55 = vpop.f32.mrf.mxu1 }
 0x181   : > { %v457_v56 = vadd.f32 %v456_v55, %v360_v44  ;;  %v989_v57 = vpack.i.bf16 %v462_v52, %v461_v51  ;;  %v463_v59 = vmax.f32 %v455_v53, 0.0 }
 0x182   : > { %v458_v58 = vpop.f32.mrf.mxu1 }
 0x183   : > { %v464_v60 = vmax.f32 %v457_v56, 0.0  ;;  %990 = vrot.lane.b32.xlu1 %v989_v57, %s1110_s12  ;;  %v1004_v4 = vpack.i.bf16 %v463_v59, %v461_v51 }
 0x184   : > { %v459_v61 = vpop.f32.mrf.mxu1 }
 0x185   : > { %v999_v62 = vpack.i.bf16 %v464_v60, %v462_v52  ;;  %v994_v63 = vpack.i.bf16 %v464_v60, %v463_v59 }
 0x187   : > { %1000 = vrot.lane.b32.xlu0 %v999_v62, %s1111_s20  ;;  %995 = vrot.lane.b32.xlu1 %v994_v63, %s1110_s12  ;;  %s1113_s12 = smov [#allocation5]  }
 0x18b   : > { %503 = vperm.xlu0 %988, %v465_v3   ;;  %1005 = vrot.lane.b32.xlu1 %v1004_v4, %s1111_s20  ;;  %s1044_s20 = sshll.u32 %s1113_s12, 4  ;;  %s1045_s20 = int_to_ptr.vmem [resolvable:$false] %s1044_s20 }
 0x18c   : > { %s1046_s22 = scalar_lea.vmem %s1045_s20, 2048  ;;  %p1047_p5 = scmp.lt.s32.totalorder %s1379_s9, %s1045_s20 }
 0x18d   : > { %p1048_p7 = scmp.lt.s32.totalorder %s1046_s22, %s1040_s15 }
 0x18f   : > { %627 = vperm.xlu0 %988, %v623_v5   ;;  %508 = vperm.xlu1 %1009, %v466_v7   ;;  %p1049_p8 = por %p1048_p7, %p1047_p5 }
 0x191   : > { %p1050_p10 = pnand %p1049_p8, %p1043_p4 }
 0x193   : > { %632 = vperm.xlu1 %1009, %v624_v8  }
 0x1f5   : > { %v991_v9 = vpop.permute.xlu1 %990 }
 0x1f6   : > { %v993_v11 = vunpack.i.h.bf16 %v991_v9  ;;  %v992_v12 = vunpack.i.l.bf16 %v991_v9 }
 0x1f8   : > { %v478_v13 = vsel %vm306_vm0, %v993_v11, 0.0  ;;  %v472_v14 = vsel %vm306_vm0, %v992_v12, 0.0 }
 0x1f9   : > { %v494_v16 = vpack.c.bf16 %v478_v13, %v478_v13  ;;  %v492_v17 = vpack.c.bf16 %v472_v14, %v472_v14  ;;  %v1001_v18 = vpop.permute.xlu0 %1000  ;;  %v996_v19 = vpop.permute.xlu1 %995 }
 0x1fa   : > { %v1002_v20 = vunpack.i.l.bf16 %v1001_v18  ;;  %v998_v21 = vunpack.i.h.bf16 %v996_v19  ;;  %v997_v22 = vunpack.i.l.bf16 %v996_v19  ;;  %v1003_v23 = vunpack.i.h.bf16 %v1001_v18 }
 0x1fb   : > { %878 = vmatprep.subr.msk.bf16.mxu0 %vm366_vm2, %v494_v16  ;;  %v520_v24 = vsel %vm366_vm2, %v492_v17, 0 }
 0x1fc   : > { %v880_v25 = vpack.c.bf16 %v462_v52, %v1002_v20  ;;  %v490_v26 = vsel %vm306_vm0, %v998_v21, 0.0  ;;  %v484_v27 = vsel %vm306_vm0, %v997_v22, 0.0  ;;  %544 = vmatpush1.bf16.msra.mxu0 %v520_v24  ;;  %v888_v34 = vpack.c.bf16 %v464_v60, %v1003_v23 }
 0x1fd   : > { %v498_v28 = vpack.c.bf16 %v490_v26, %v490_v26  ;;  %v496_v29 = vpack.c.bf16 %v484_v27, %v484_v27  ;;  %v1006_v30 = vpop.permute.xlu1 %1005 }
 0x1fe   : > { %v1008_v32 = vunpack.i.h.bf16 %v1006_v30  ;;  %v1007_v33 = vunpack.i.l.bf16 %v1006_v30  ;;  %881 = vmatprep.subr.msk.bf16.mxu0 %vm1292_vm4, %v880_v25 }
 0x1ff   : > { %886 = vmatprep.subr.msk.bf16.mxu1 %vm366_vm2, %v498_v28  ;;  %v526_v35 = vsel %vm366_vm2, %v496_v29, 0 }
 0x200   : > { %v883_v37 = vpack.c.bf16 %v461_v51, %v1007_v33  ;;  %587 = vmatpush1.bf16.msra.mxu1 %v526_v35  ;;  %v891_v41 = vpack.c.bf16 %v463_v59, %v1008_v32 }
 0x201   : > { %889 = vmatprep.subr.msk.bf16.mxu1 %vm1292_vm4, %v888_v34 }
 0x202   : > { %884 = vmatpush1.bf16.msk.msra.mxu0 %vm1292_vm4, %v883_v37 }
 0x203   : > { %895 = vmatprep.subr.msk.bf16.mxu0 %vm366_vm2, %v618_v36 }
 0x204   : > { %892 = vmatpush1.bf16.msk.msra.mxu1 %vm1292_vm4, %v891_v41 }
 0x205   : > { %885 = vmatmul.mubr.msk.bf16.vlgmr.msra.gmra.mxu0 %vm362_vm5, %v1010_v38  ;;  %897 = vmatprep.subr.msk.bf16.mxu1 %vm366_vm2, %v620_v39 }
 0x206   : > { %671 = vmatpush1.bf16.msra.mxu0 %v645_v0  ;;  %688 = vmatprep.mubr.bf16.mxu0 %v1109_v10  ;;  %v504_v31 = vpop.permute.xlu0 %503 }
 0x207   : > { %893 = vmatmul.mubr.msk.bf16.vlgmr.msra.gmra.mxu1 %vm362_vm5, %v1010_v38 }
 0x208   : > { %714 = vmatpush1.bf16.msra.mxu1 %v651_v1  ;;  %731 = vmatprep.mubr.bf16.mxu1 %v1109_v10 }
 0x20a   : > { %v509_v46 = vpop.permute.xlu1 %508  ;;  %v628_v49 = vpop.permute.xlu0 %627 }
 0x20d   : > { %896 = vmatmul.mubr.msk.bf16.vlgmr.msra.gmra.mxu0 %vm640_vm6, %v1011_v2 }
 0x20e   : > { %v633_v53 = vpop.permute.xlu1 %632 }
 0x20f   : > { %898 = vmatmul.mubr.msk.bf16.vlgmr.msra.gmra.mxu1 %vm640_vm6, %v1011_v2 }
 0x2c5   : > { %v565_v6 = vpop.f32.mrf.mxu0 }
 0x2c6   : > { %v566_v51 = vadd.f32 %v565_v6, %v504_v31 }
 0x2c7   : > { %v567_v42 = vpop.f32.mrf.mxu0  ;;  %v608_v43 = vpop.f32.mrf.mxu1 }
 0x2c8   : > { %v568_v54 = vadd.f32 %v567_v42, %v504_v31  ;;  %v609_v57 = vadd.f32 %v608_v43, %v504_v31 }
 0x2c9   : > { %v569_v44 = vpop.f32.mrf.mxu0  ;;  %v610_v45 = vpop.f32.mrf.mxu1 }
 0x2ca   : > { %v570_v61 = vadd.f32 %v569_v44, %v509_v46  ;;  %v611_v62 = vadd.f32 %v610_v45, %v504_v31 }
 0x2cb   : > { %v571_v47 = vpop.f32.mrf.mxu0  ;;  %v612_v48 = vpop.f32.mrf.mxu1 }
 0x2cc   : > { %v572_v9 = vadd.f32 %v571_v47, %v509_v46  ;;  %v613_v11 = vadd.f32 %v612_v48, %v509_v46 }
 0x2cd   : > { %v614_v50 = vpop.f32.mrf.mxu1  ;;  %v690_v10 = vpop.f32.mrf.mxu0 }
 0x2ce   : > { %v691_v52 = vadd.f32 %v690_v10, %v628_v49  ;;  %v615_v20 = vadd.f32 %v614_v50, %v509_v46 }
 0x2cf   : > { %v692_v55 = vpop.f32.mrf.mxu0  ;;  %v733_v56 = vpop.f32.mrf.mxu1 }
 0x2d0   : > { %v742_v58 = vadd.f32 %v691_v52, %v566_v51  ;;  %v693_v59 = vadd.f32 %v692_v55, %v628_v49  ;;  %v734_v60 = vadd.f32 %v733_v56, %v628_v49 }
 0x2d1   : > { %v694_v63 = vpop.f32.mrf.mxu0  ;;  %v735_v3 = vpop.f32.mrf.mxu1 }
 0x2d2   : > { %750 = vst [vmem:[%s296_s21] sm:$0xff] %v742_v58  ;;  %v743_v4 = vadd.f32 %v693_v59, %v568_v54  ;;  %v744_v5 = vadd.f32 %v734_v60, %v609_v57  ;;  %v695_v7 = vadd.f32 %v694_v63, %v633_v53  ;;  %v736_v8 = vadd.f32 %v735_v3, %v628_v49 }
 0x2d3   : > { %v696_v12 = vpop.f32.mrf.mxu0  ;;  %v737_v13 = vpop.f32.mrf.mxu1 }
 0x2d4   : > { %899 = vst [vmem:[%s296_s21 + $0x10] sm:$0xff] %v743_v4  ;;  %901 = vst [vmem:[%s296_s21 + $0x20] sm:$0xff] %v744_v5  ;;  %v746_v14 = vadd.f32 %v695_v7, %v570_v61  ;;  %v745_v16 = vadd.f32 %v736_v8, %v611_v62  ;;  %v697_v17 = vadd.f32 %v696_v12, %v633_v53 }
 0x2d5   : > { %v738_v18 = vadd.f32 %v737_v13, %v633_v53  ;;  %v739_v19 = vpop.f32.mrf.mxu1 }
 0x2d6   : > { %751 = vst [vmem:[%s296_s21 + $0x8] sm:$0xff] %v746_v14  ;;  %903 = vst [vmem:[%s296_s21 + $0x30] sm:$0xff] %v745_v16  ;;  %v747_v21 = vadd.f32 %v697_v17, %v572_v9  ;;  %v740_v23 = vadd.f32 %v739_v19, %v633_v53 }
 0x2d7   : > { %v748_v22 = vadd.f32 %v738_v18, %v613_v11 }
 0x2d8   : > { %900 = vst [vmem:[%s296_s21 + $0x18] sm:$0xff] %v747_v21  ;;  %v749_v24 = vadd.f32 %v740_v23, %v615_v20 }
 0x2d9   : > { %902 = vst [vmem:[%s296_s21 + $0x28] sm:$0xff] %v748_v22 }
 0x2da   : > { %904 = vst [vmem:[%s296_s21 + $0x38] sm:$0xff] %v749_v24 }
 0x2db   : > { %1053 = shalt.err (!%p1050_p10)
}
 0x2dc   : > { %s1054_s23 = scalar_lea.hbm %s1384_s18, 1024  ;;  %s1058_s21 = scalar_lea.hbm %s1434_s7, 2048 }
 0x2dd   : > { %p1055_p0 = scmp.ne.s32.totalorder %s1384_s18, %s1054_s23  ;;  %p1059_p1 = scmp.lt.s32.totalorder %s1384_s18, %s1434_s7 }
 0x2de   : > { %p1060_p3 = scmp.lt.s32.totalorder %s1058_s21, %s1054_s23 }
 0x2df   : > { %p1056_p2 = pnand %p1055_p0, %p1445_p12 }
 0x2e0   : > { %p1061_p6 = por %p1060_p3, %p1059_p1 }
 0x2e1   : > { %p1057_p9 = pneg %p1056_p2 }
 0x2e3   : > { %p1062_p11 = pnand %p1061_p6, %p1057_p9 }
 0x2e5   : > { %1065 = shalt.err (!%p1062_p11)
}
 0x2e6   : > { %s1114_s11 = smov 128   ;;  %s1115_s15 = smov 8  }
 0x2e7   : > { %916 = dma.vmem_to_hbm [thread:$0]  (%p1445_p12), %s1379_s9, 1024, %s1384_s18, %s762_s28, %s1114_s11, %s1114_s11, %s1115_s15  }
 0x2e8 PF: > { %s791_s12 = sand.u32 1, %s1092_s24   ;;  %p1446_p13 = scmp.ne.s32.totalorder %s1440_s14, 0 }
 0x2e9   : > { %p1447_p4 = scmp.ge.s32.totalorder %s1104_s27, 2  ;;  %s792_s20 = scalar_lea.sflag [#allocation4], %s791_s12 }
 0x2eb   : > { %p923_p5 = pnand %p1447_p4, %p1446_p13 }
 0x2ed   : > { %p924_p7 = pneg %p923_p5 }
 0x2ef   : > { %1087 = dma.done.wait (%p924_p7), %s792_s20, 1024  }
 0x2f0   : > { %1089 = vsyncadd (%p924_p7), %s792_s20, 4294966272  ;;  %p20_p8 = scmp.ge.s32.totalorder %s1181_s30, 4   ;;  %s1448_s24 = smov %s1096_s25 }
 0x2f1   : > { %s1449_s25 = smov %s1100_s26  ;;  %s1450_s26 = smov %s1193_s10 }
 0x2f2   : > { %s1451_s27 = smov %s1181_s30  ;;  %22 = sbr.rel (!%p20_p8) target bundleno = 5 (0x5), region = 99 }
 0x2f7   :  { %797 = vsyncpa [#allocation3], 1 }
 0x2f8   :  { %799 = vsyncpa [#allocation3 + $0x1], 1 }
 0x2f9   :  { %800 = vsyncpa [#allocation4], 1 }
 0x2fa   :  { %802 = vsyncpa [#allocation4 + $0x1], 1 }

</bundles_post_ra>
